<compile_context>
chip_gen: v7x
topology: tpu7x:2x2x1
jax: 0.10.0
libtpu: 0.0.40
codegen_flags: <defaults>
</compile_context>

<pallas_src>
import functools

import jax
import jax.numpy as jnp
from jax import lax
from jax.experimental import pallas as pl
from jax.experimental.pallas import tpu as pltpu


def attn_kernel(x_ref, wqkv_ref, wproj_ref, bias_ref, out_ref, o_scratch, *,
                n_heads, block_b, seq_len):
    """One grid step = `block_b` batch elements, rows flattened to (block_b*N, C)."""
    m, c = x_ref.shape                       # m = block_b * seq_len
    n = seq_len
    dh = c // n_heads

    # 1) Fused QKV projection for the whole (block_b*N, C) slab: one MXU
    #    contraction with K = C.  Softmax scale already folded into the Q
    #    columns of the weight on the host.  Single f32 -> bf16 cast.
    qkv = jnp.dot(x_ref[...], wqkv_ref[...],
                  preferred_element_type=jnp.float32)            # (m, 3C) f32
    qkv = qkv.astype(jnp.bfloat16)

    # 2) Gather per-(batch, head) q/k/v tiles once and run QK^T / P@V as single
    #    batched MXU contractions over the (block_b * n_heads) leading axis.
    q_parts, k_parts, v_parts = [], [], []
    for b in range(block_b):
        r0, r1 = b * n, (b + 1) * n
        for h in range(n_heads):
            c0, c1 = h * dh, (h + 1) * dh
            q_parts.append(qkv[r0:r1, c0:c1])
            k_parts.append(qkv[r0:r1, c + c0:c + c1])
            v_parts.append(qkv[r0:r1, 2 * c + c0:2 * c + c1])
    q = jnp.stack(q_parts)                                       # (Bb*H, N, Dh) bf16
    k = jnp.stack(k_parts)                                       # (Bb*H, N, Dh) bf16
    v = jnp.stack(v_parts)                                       # (Bb*H, N, Dh) bf16

    # scores = einsum('gqd,gkd->gqk'); K-transpose absorbed into the MXU feed.
    s = lax.dot_general(q, k, (((2,), (2,)), ((0,), (0,))),
                        preferred_element_type=jnp.float32)      # (Bb*H, N, N) f32

    # Numerically stable softmax, kept in f32 (safe on all of v5e/v6e/v7x).
    # The normalization uses the EUP reciprocal slot (otherwise idle here).
    s = s - jnp.max(s, axis=-1, keepdims=True)
    p = jnp.exp(s)
    p = p * pl.reciprocal(jnp.sum(p, axis=-1, keepdims=True), approx=True)

    o = lax.dot_general(p.astype(jnp.bfloat16), v,
                        (((2,), (1,)), ((0,), (0,))),
                        preferred_element_type=jnp.float32)      # (Bb*H, N, Dh) f32

    # 3) Scatter head outputs into the VMEM scratch at static column offsets
    #    (plain stores; replaces the lane-axis concatenate).  Head-major column
    #    order matches torch's transpose(1, 2).reshape(b, n, c).
    for b in range(block_b):
        r0, r1 = b * n, (b + 1) * n
        for h in range(n_heads):
            o_scratch[r0:r1, h * dh:(h + 1) * dh] = o[b * n_heads + h]

    # 4) One output projection + bias for the whole slab; output written once.
    out = jnp.dot(o_scratch[...].astype(jnp.bfloat16), wproj_ref[...],
                  preferred_element_type=jnp.float32) + bias_ref[...]
    out_ref[...] = out.astype(out_ref.dtype)


def _pick_block_b(batch, seq):
    """Largest divisor of `batch` with block_b*seq <= 256 rows per step, but keep
    >= 2 grid steps (two v7x TensorCores) when each step still has >= 128 rows."""
    divisors = [d for d in range(1, batch + 1) if batch % d == 0]
    fits = [d for d in divisors if d * seq <= 256]
    bb = max(fits) if fits else 1
    if batch // bb < 2:
        alt = [d for d in divisors if d < bb and d * seq >= 128]
        if alt:
            bb = max(alt)
    return bb


def attention_forward(x, w_qkv, w_proj, b_proj, n_heads, block_b=None):
    """x: (B, N, C); w_qkv: (3C, C) torch-Linear weight; w_proj: (C, C); b_proj: (C,)."""
    B, N, C = x.shape
    H = n_heads
    Dh = C // H
    scale = Dh ** (-0.5)

    if block_b is None:
        block_b = _pick_block_b(B, N)
    assert B % block_b == 0
    rows = block_b * N

    # torch computes y = x @ W^T; transpose once on the host.  Fold the softmax
    # scale into the Q columns (first C columns) of the fused QKV weight so the
    # kernel never scales the (N, N) score tiles.  Column order of w_qkv_t is
    # (which in {q,k,v}, head, head_dim) -- exactly the reshape order in the
    # PyTorch forward -- so the kernel slices heads directly out of the fused
    # QKV result.
    w_qkv_t = jnp.transpose(w_qkv)                                # (C, 3C) f32
    w_qkv_t = w_qkv_t.at[:, :C].multiply(scale).astype(jnp.bfloat16)
    w_proj_t = jnp.transpose(w_proj).astype(jnp.bfloat16)         # (C, C)
    bias = b_proj.reshape(1, C).astype(jnp.float32)
    x2d = x.reshape(B * N, C).astype(jnp.bfloat16)                # (B*N, C)

    kernel = functools.partial(attn_kernel, n_heads=H, block_b=block_b, seq_len=N)

    # Advisory cost estimate for XLA scheduling around the fused custom call.
    flops = (2 * B * N * C * 3 * C            # fused QKV projection
             + 4 * B * H * N * N * Dh         # QK^T and P@V
             + 2 * B * N * C * C)             # output projection
    bytes_accessed = int(x2d.size * 2 + w_qkv_t.size * 2 + w_proj_t.size * 2
                         + bias.size * 4 + B * N * C * jnp.dtype(x.dtype).itemsize)
    cost = pl.CostEstimate(flops=flops, transcendentals=B * H * N * N,
                           bytes_accessed=bytes_accessed)

    # Working-set estimate (resident weights + double-buffered x/out tiles + qkv
    # + score/prob tiles + head-output scratch) with headroom; clamped to a
    # range that is safe on v5e/v6e (128 MiB physical) and v7x (64 MiB physical).
    work = (2 * (3 * C * C + C * C)                    # resident weights, bf16
            + 2 * 2 * rows * C * 2                     # x in, bf16, double-buffered
            + 2 * rows * C * 4                         # out, f32, double-buffered
            + rows * 3 * C * 2                         # qkv, bf16
            + 2 * block_b * H * N * N * 4              # scores + probs, f32
            + rows * C * 4)                            # head-output scratch, f32
    vmem_bytes = int(min(max(work * 3 // 2, 32 * 1024 * 1024), 64 * 1024 * 1024))

    out2d = pl.pallas_call(
        kernel,
        out_shape=jax.ShapeDtypeStruct((B * N, C), x.dtype),
        grid=(B // block_b,),
        in_specs=[
            pl.BlockSpec((rows, C), lambda i: (i, 0)),        # x rows for this step
            pl.BlockSpec((C, 3 * C), lambda i: (0, 0)),       # fused QKV weight (resident)
            pl.BlockSpec((C, C), lambda i: (0, 0)),           # proj weight (resident)
            pl.BlockSpec((1, C), lambda i: (0, 0)),           # proj bias (resident)
        ],
        out_specs=pl.BlockSpec((rows, C), lambda i: (i, 0)),
        scratch_shapes=[pltpu.VMEM((rows, C), jnp.float32)],  # concatenated head outputs
        compiler_params=pltpu.CompilerParams(
            dimension_semantics=("parallel",),                # shard batch steps across TCs
            vmem_limit_bytes=vmem_bytes),
        cost_estimate=cost,
    )(x2d, w_qkv_t, w_proj_t, bias)

    return out2d.reshape(B, N, C)


def attention_reference(x, w_qkv, w_proj, b_proj, n_heads):
    """Plain-JAX (f32) transcription of the PyTorch forward, for verification."""
    b, n, c = x.shape
    dh = c // n_heads
    scale = dh ** (-0.5)
    qkv = x @ w_qkv.T                                         # (b, n, 3c)
    qkv = qkv.reshape(b, n, 3, n_heads, dh).transpose(2, 0, 3, 1, 4)
    q, k, v = qkv[0], qkv[1], qkv[2]                          # (b, h, n, dh)
    attn = jnp.einsum('bhnd,bhmd->bhnm', q, k) * scale
    attn = jax.nn.softmax(attn, axis=-1)
    o = jnp.einsum('bhnm,bhmd->bhnd', attn, v)
    o = o.transpose(0, 2, 1, 3).reshape(b, n, c)
    return o @ w_proj.T + b_proj


if __name__ == "__main__":
    B, N, C, H = 2, 16, 32, 8          # dim=32, n_heads=8 -> head_dim=4

    key = jax.random.PRNGKey(0)
    kx, kqkv, kproj, kbias = jax.random.split(key, 4)

    x = jax.random.normal(kx, (B, N, C), dtype=jnp.float32)
    # Deterministic synthetic parameters (shapes from nn.Linear in __init__).
    w_qkv = 0.05 * jax.random.normal(kqkv, (3 * C, C), dtype=jnp.float32)   # qkv_bias=False
    w_proj = 0.05 * jax.random.normal(kproj, (C, C), dtype=jnp.float32)
    b_proj = 0.05 * jax.random.normal(kbias, (C,), dtype=jnp.float32)

    out = attention_forward(x, w_qkv, w_proj, b_proj, H)
    out = jax.block_until_ready(out)

    ref = attention_reference(x, w_qkv, w_proj, b_proj, H)
    assert out.shape == (B, N, C)
    # Tolerance accounts for bf16 MXU operands (f32 accumulation) and the
    # approximate EUP reciprocal in the softmax normalization.
    assert jnp.allclose(out, ref, atol=2e-2, rtol=2e-2), "mismatch vs reference"

    print("KERNEL_OK")
</pallas_src>

<mosaic_0001>
module attributes {stable_mosaic.version = 11 : i64} {
  func.func @attn_kernel(%arg0: i32, %arg1: memref<32x32xbf16, #tpu.memory_space<vmem>>, %arg2: memref<32x96xbf16, #tpu.memory_space<vmem>>, %arg3: memref<32x32xbf16, #tpu.memory_space<vmem>>, %arg4: memref<1x32xf32, #tpu.memory_space<vmem>>, %arg5: memref<32x32xf32, #tpu.memory_space<vmem>>, %arg6: memref<32x32xf32, #tpu.memory_space<vmem>>) attributes {dimension_semantics = [#tpu.dimension_semantics<parallel>], iteration_bounds = array<i64: 1>, scalar_prefetch = 0 : i64, scratch_operands = 1 : i64, tpu.core_type = #tpu.core_type<tc>, window_params = [{transform_indices = @transform_0, window_bounds = array<i64: 32, 32>}, {pipeline_mode = #tpu.pipeline_mode<synchronous>, transform_indices = @transform_1, window_bounds = array<i64: 32, 96>}, {pipeline_mode = #tpu.pipeline_mode<synchronous>, transform_indices = @transform_2, window_bounds = array<i64: 32, 32>}, {pipeline_mode = #tpu.pipeline_mode<synchronous>, transform_indices = @transform_3, window_bounds = array<i64: 1, 32>}, {transform_indices = @transform_4, window_bounds = array<i64: 32, 32>}]} {
    %c0 = arith.constant 0 : index
    %c0_0 = arith.constant 0 : index
    %0 = vector.load %arg1[%c0, %c0_0] : memref<32x32xbf16, #tpu.memory_space<vmem>>, vector<32x32xbf16>
    %c0_1 = arith.constant 0 : index
    %c0_2 = arith.constant 0 : index
    %1 = vector.load %arg2[%c0_1, %c0_2] : memref<32x96xbf16, #tpu.memory_space<vmem>>, vector<32x96xbf16>
    %cst = arith.constant dense<0.000000e+00> : vector<32x96xf32>
    %2 = tpu.matmul %0, %1, %cst {dimension_numbers = #tpu.dot_dimension_numbers<[1], [0], [0], [1], [0, 0, 1, 1], [], []>} : vector<32x32xbf16>, vector<32x96xbf16>, vector<32x96xf32> -> vector<32x96xf32>
    %3 = arith.truncf %2 : vector<32x96xf32> to vector<32x96xbf16>
    %4 = vector.extract_strided_slice %3 {offsets = [0, 0], sizes = [16, 4], strides = [1, 1]} : vector<32x96xbf16> to vector<16x4xbf16>
    %5 = vector.extract_strided_slice %3 {offsets = [0, 32], sizes = [16, 4], strides = [1, 1]} : vector<32x96xbf16> to vector<16x4xbf16>
    %6 = vector.extract_strided_slice %3 {offsets = [0, 64], sizes = [16, 4], strides = [1, 1]} : vector<32x96xbf16> to vector<16x4xbf16>
    %7 = vector.extract_strided_slice %3 {offsets = [0, 4], sizes = [16, 4], strides = [1, 1]} : vector<32x96xbf16> to vector<16x4xbf16>
    %8 = vector.extract_strided_slice %3 {offsets = [0, 36], sizes = [16, 4], strides = [1, 1]} : vector<32x96xbf16> to vector<16x4xbf16>
    %9 = vector.extract_strided_slice %3 {offsets = [0, 68], sizes = [16, 4], strides = [1, 1]} : vector<32x96xbf16> to vector<16x4xbf16>
    %10 = vector.extract_strided_slice %3 {offsets = [0, 8], sizes = [16, 4], strides = [1, 1]} : vector<32x96xbf16> to vector<16x4xbf16>
    %11 = vector.extract_strided_slice %3 {offsets = [0, 40], sizes = [16, 4], strides = [1, 1]} : vector<32x96xbf16> to vector<16x4xbf16>
    %12 = vector.extract_strided_slice %3 {offsets = [0, 72], sizes = [16, 4], strides = [1, 1]} : vector<32x96xbf16> to vector<16x4xbf16>
    %13 = vector.extract_strided_slice %3 {offsets = [0, 12], sizes = [16, 4], strides = [1, 1]} : vector<32x96xbf16> to vector<16x4xbf16>
    %14 = vector.extract_strided_slice %3 {offsets = [0, 44], sizes = [16, 4], strides = [1, 1]} : vector<32x96xbf16> to vector<16x4xbf16>
    %15 = vector.extract_strided_slice %3 {offsets = [0, 76], sizes = [16, 4], strides = [1, 1]} : vector<32x96xbf16> to vector<16x4xbf16>
    %16 = vector.extract_strided_slice %3 {offsets = [0, 16], sizes = [16, 4], strides = [1, 1]} : vector<32x96xbf16> to vector<16x4xbf16>
    %17 = vector.extract_strided_slice %3 {offsets = [0, 48], sizes = [16, 4], strides = [1, 1]} : vector<32x96xbf16> to vector<16x4xbf16>
    %18 = vector.extract_strided_slice %3 {offsets = [0, 80], sizes = [16, 4], strides = [1, 1]} : vector<32x96xbf16> to vector<16x4xbf16>
    %19 = vector.extract_strided_slice %3 {offsets = [0, 20], sizes = [16, 4], strides = [1, 1]} : vector<32x96xbf16> to vector<16x4xbf16>
    %20 = vector.extract_strided_slice %3 {offsets = [0, 52], sizes = [16, 4], strides = [1, 1]} : vector<32x96xbf16> to vector<16x4xbf16>
    %21 = vector.extract_strided_slice %3 {offsets = [0, 84], sizes = [16, 4], strides = [1, 1]} : vector<32x96xbf16> to vector<16x4xbf16>
    %22 = vector.extract_strided_slice %3 {offsets = [0, 24], sizes = [16, 4], strides = [1, 1]} : vector<32x96xbf16> to vector<16x4xbf16>
    %23 = vector.extract_strided_slice %3 {offsets = [0, 56], sizes = [16, 4], strides = [1, 1]} : vector<32x96xbf16> to vector<16x4xbf16>
    %24 = vector.extract_strided_slice %3 {offsets = [0, 88], sizes = [16, 4], strides = [1, 1]} : vector<32x96xbf16> to vector<16x4xbf16>
    %25 = vector.extract_strided_slice %3 {offsets = [0, 28], sizes = [16, 4], strides = [1, 1]} : vector<32x96xbf16> to vector<16x4xbf16>
    %26 = vector.extract_strided_slice %3 {offsets = [0, 60], sizes = [16, 4], strides = [1, 1]} : vector<32x96xbf16> to vector<16x4xbf16>
    %27 = vector.extract_strided_slice %3 {offsets = [0, 92], sizes = [16, 4], strides = [1, 1]} : vector<32x96xbf16> to vector<16x4xbf16>
    %28 = vector.extract_strided_slice %3 {offsets = [16, 0], sizes = [16, 4], strides = [1, 1]} : vector<32x96xbf16> to vector<16x4xbf16>
    %29 = vector.extract_strided_slice %3 {offsets = [16, 32], sizes = [16, 4], strides = [1, 1]} : vector<32x96xbf16> to vector<16x4xbf16>
    %30 = vector.extract_strided_slice %3 {offsets = [16, 64], sizes = [16, 4], strides = [1, 1]} : vector<32x96xbf16> to vector<16x4xbf16>
    %31 = vector.extract_strided_slice %3 {offsets = [16, 4], sizes = [16, 4], strides = [1, 1]} : vector<32x96xbf16> to vector<16x4xbf16>
    %32 = vector.extract_strided_slice %3 {offsets = [16, 36], sizes = [16, 4], strides = [1, 1]} : vector<32x96xbf16> to vector<16x4xbf16>
    %33 = vector.extract_strided_slice %3 {offsets = [16, 68], sizes = [16, 4], strides = [1, 1]} : vector<32x96xbf16> to vector<16x4xbf16>
    %34 = vector.extract_strided_slice %3 {offsets = [16, 8], sizes = [16, 4], strides = [1, 1]} : vector<32x96xbf16> to vector<16x4xbf16>
    %35 = vector.extract_strided_slice %3 {offsets = [16, 40], sizes = [16, 4], strides = [1, 1]} : vector<32x96xbf16> to vector<16x4xbf16>
    %36 = vector.extract_strided_slice %3 {offsets = [16, 72], sizes = [16, 4], strides = [1, 1]} : vector<32x96xbf16> to vector<16x4xbf16>
    %37 = vector.extract_strided_slice %3 {offsets = [16, 12], sizes = [16, 4], strides = [1, 1]} : vector<32x96xbf16> to vector<16x4xbf16>
    %38 = vector.extract_strided_slice %3 {offsets = [16, 44], sizes = [16, 4], strides = [1, 1]} : vector<32x96xbf16> to vector<16x4xbf16>
    %39 = vector.extract_strided_slice %3 {offsets = [16, 76], sizes = [16, 4], strides = [1, 1]} : vector<32x96xbf16> to vector<16x4xbf16>
    %40 = vector.extract_strided_slice %3 {offsets = [16, 16], sizes = [16, 4], strides = [1, 1]} : vector<32x96xbf16> to vector<16x4xbf16>
    %41 = vector.extract_strided_slice %3 {offsets = [16, 48], sizes = [16, 4], strides = [1, 1]} : vector<32x96xbf16> to vector<16x4xbf16>
    %42 = vector.extract_strided_slice %3 {offsets = [16, 80], sizes = [16, 4], strides = [1, 1]} : vector<32x96xbf16> to vector<16x4xbf16>
    %43 = vector.extract_strided_slice %3 {offsets = [16, 20], sizes = [16, 4], strides = [1, 1]} : vector<32x96xbf16> to vector<16x4xbf16>
    %44 = vector.extract_strided_slice %3 {offsets = [16, 52], sizes = [16, 4], strides = [1, 1]} : vector<32x96xbf16> to vector<16x4xbf16>
    %45 = vector.extract_strided_slice %3 {offsets = [16, 84], sizes = [16, 4], strides = [1, 1]} : vector<32x96xbf16> to vector<16x4xbf16>
    %46 = vector.extract_strided_slice %3 {offsets = [16, 24], sizes = [16, 4], strides = [1, 1]} : vector<32x96xbf16> to vector<16x4xbf16>
    %47 = vector.extract_strided_slice %3 {offsets = [16, 56], sizes = [16, 4], strides = [1, 1]} : vector<32x96xbf16> to vector<16x4xbf16>
    %48 = vector.extract_strided_slice %3 {offsets = [16, 88], sizes = [16, 4], strides = [1, 1]} : vector<32x96xbf16> to vector<16x4xbf16>
    %49 = vector.extract_strided_slice %3 {offsets = [16, 28], sizes = [16, 4], strides = [1, 1]} : vector<32x96xbf16> to vector<16x4xbf16>
    %50 = vector.extract_strided_slice %3 {offsets = [16, 60], sizes = [16, 4], strides = [1, 1]} : vector<32x96xbf16> to vector<16x4xbf16>
    %51 = vector.extract_strided_slice %3 {offsets = [16, 92], sizes = [16, 4], strides = [1, 1]} : vector<32x96xbf16> to vector<16x4xbf16>
    %52 = vector.shape_cast %4 : vector<16x4xbf16> to vector<1x16x4xbf16>
    %53 = vector.shape_cast %7 : vector<16x4xbf16> to vector<1x16x4xbf16>
    %54 = vector.shape_cast %10 : vector<16x4xbf16> to vector<1x16x4xbf16>
    %55 = vector.shape_cast %13 : vector<16x4xbf16> to vector<1x16x4xbf16>
    %56 = vector.shape_cast %16 : vector<16x4xbf16> to vector<1x16x4xbf16>
    %57 = vector.shape_cast %19 : vector<16x4xbf16> to vector<1x16x4xbf16>
    %58 = vector.shape_cast %22 : vector<16x4xbf16> to vector<1x16x4xbf16>
    %59 = vector.shape_cast %25 : vector<16x4xbf16> to vector<1x16x4xbf16>
    %60 = vector.shape_cast %28 : vector<16x4xbf16> to vector<1x16x4xbf16>
    %61 = vector.shape_cast %31 : vector<16x4xbf16> to vector<1x16x4xbf16>
    %62 = vector.shape_cast %34 : vector<16x4xbf16> to vector<1x16x4xbf16>
    %63 = vector.shape_cast %37 : vector<16x4xbf16> to vector<1x16x4xbf16>
    %64 = vector.shape_cast %40 : vector<16x4xbf16> to vector<1x16x4xbf16>
    %65 = vector.shape_cast %43 : vector<16x4xbf16> to vector<1x16x4xbf16>
    %66 = vector.shape_cast %46 : vector<16x4xbf16> to vector<1x16x4xbf16>
    %67 = vector.shape_cast %49 : vector<16x4xbf16> to vector<1x16x4xbf16>
    %68 = tpu.concatenate %52, %53, %54, %55, %56, %57, %58, %59, %60, %61, %62, %63, %64, %65, %66, %67 in 0 : vector<1x16x4xbf16>, vector<1x16x4xbf16>, vector<1x16x4xbf16>, vector<1x16x4xbf16>, vector<1x16x4xbf16>, vector<1x16x4xbf16>, vector<1x16x4xbf16>, vector<1x16x4xbf16>, vector<1x16x4xbf16>, vector<1x16x4xbf16>, vector<1x16x4xbf16>, vector<1x16x4xbf16>, vector<1x16x4xbf16>, vector<1x16x4xbf16>, vector<1x16x4xbf16>, vector<1x16x4xbf16> -> vector<16x16x4xbf16>
    %69 = vector.shape_cast %5 : vector<16x4xbf16> to vector<1x16x4xbf16>
    %70 = vector.shape_cast %8 : vector<16x4xbf16> to vector<1x16x4xbf16>
    %71 = vector.shape_cast %11 : vector<16x4xbf16> to vector<1x16x4xbf16>
    %72 = vector.shape_cast %14 : vector<16x4xbf16> to vector<1x16x4xbf16>
    %73 = vector.shape_cast %17 : vector<16x4xbf16> to vector<1x16x4xbf16>
    %74 = vector.shape_cast %20 : vector<16x4xbf16> to vector<1x16x4xbf16>
    %75 = vector.shape_cast %23 : vector<16x4xbf16> to vector<1x16x4xbf16>
    %76 = vector.shape_cast %26 : vector<16x4xbf16> to vector<1x16x4xbf16>
    %77 = vector.shape_cast %29 : vector<16x4xbf16> to vector<1x16x4xbf16>
    %78 = vector.shape_cast %32 : vector<16x4xbf16> to vector<1x16x4xbf16>
    %79 = vector.shape_cast %35 : vector<16x4xbf16> to vector<1x16x4xbf16>
    %80 = vector.shape_cast %38 : vector<16x4xbf16> to vector<1x16x4xbf16>
    %81 = vector.shape_cast %41 : vector<16x4xbf16> to vector<1x16x4xbf16>
    %82 = vector.shape_cast %44 : vector<16x4xbf16> to vector<1x16x4xbf16>
    %83 = vector.shape_cast %47 : vector<16x4xbf16> to vector<1x16x4xbf16>
    %84 = vector.shape_cast %50 : vector<16x4xbf16> to vector<1x16x4xbf16>
    %85 = tpu.concatenate %69, %70, %71, %72, %73, %74, %75, %76, %77, %78, %79, %80, %81, %82, %83, %84 in 0 : vector<1x16x4xbf16>, vector<1x16x4xbf16>, vector<1x16x4xbf16>, vector<1x16x4xbf16>, vector<1x16x4xbf16>, vector<1x16x4xbf16>, vector<1x16x4xbf16>, vector<1x16x4xbf16>, vector<1x16x4xbf16>, vector<1x16x4xbf16>, vector<1x16x4xbf16>, vector<1x16x4xbf16>, vector<1x16x4xbf16>, vector<1x16x4xbf16>, vector<1x16x4xbf16>, vector<1x16x4xbf16> -> vector<16x16x4xbf16>
    %86 = vector.shape_cast %6 : vector<16x4xbf16> to vector<1x16x4xbf16>
    %87 = vector.shape_cast %9 : vector<16x4xbf16> to vector<1x16x4xbf16>
    %88 = vector.shape_cast %12 : vector<16x4xbf16> to vector<1x16x4xbf16>
    %89 = vector.shape_cast %15 : vector<16x4xbf16> to vector<1x16x4xbf16>
    %90 = vector.shape_cast %18 : vector<16x4xbf16> to vector<1x16x4xbf16>
    %91 = vector.shape_cast %21 : vector<16x4xbf16> to vector<1x16x4xbf16>
    %92 = vector.shape_cast %24 : vector<16x4xbf16> to vector<1x16x4xbf16>
    %93 = vector.shape_cast %27 : vector<16x4xbf16> to vector<1x16x4xbf16>
    %94 = vector.shape_cast %30 : vector<16x4xbf16> to vector<1x16x4xbf16>
    %95 = vector.shape_cast %33 : vector<16x4xbf16> to vector<1x16x4xbf16>
    %96 = vector.shape_cast %36 : vector<16x4xbf16> to vector<1x16x4xbf16>
    %97 = vector.shape_cast %39 : vector<16x4xbf16> to vector<1x16x4xbf16>
    %98 = vector.shape_cast %42 : vector<16x4xbf16> to vector<1x16x4xbf16>
    %99 = vector.shape_cast %45 : vector<16x4xbf16> to vector<1x16x4xbf16>
    %100 = vector.shape_cast %48 : vector<16x4xbf16> to vector<1x16x4xbf16>
    %101 = vector.shape_cast %51 : vector<16x4xbf16> to vector<1x16x4xbf16>
    %102 = tpu.concatenate %86, %87, %88, %89, %90, %91, %92, %93, %94, %95, %96, %97, %98, %99, %100, %101 in 0 : vector<1x16x4xbf16>, vector<1x16x4xbf16>, vector<1x16x4xbf16>, vector<1x16x4xbf16>, vector<1x16x4xbf16>, vector<1x16x4xbf16>, vector<1x16x4xbf16>, vector<1x16x4xbf16>, vector<1x16x4xbf16>, vector<1x16x4xbf16>, vector<1x16x4xbf16>, vector<1x16x4xbf16>, vector<1x16x4xbf16>, vector<1x16x4xbf16>, vector<1x16x4xbf16>, vector<1x16x4xbf16> -> vector<16x16x4xbf16>
    %cst_3 = arith.constant dense<0.000000e+00> : vector<16x16x16xf32>
    %103 = tpu.matmul %68, %85, %cst_3 {dimension_numbers = #tpu.dot_dimension_numbers<[2], [2], [1], [1], [0, 0, 0, 1, 1, 1], [0], [0]>} : vector<16x16x4xbf16>, vector<16x16x4xbf16>, vector<16x16x16xf32> -> vector<16x16x16xf32>
    %cst_4 = arith.constant dense<0xFF800000> : vector<16x16xf32>
    %104 = vector.multi_reduction <maximumf>, %103, %cst_4 [2] : vector<16x16x16xf32> to vector<16x16xf32>
    %105 = vector.shape_cast %104 : vector<16x16xf32> to vector<16x16x1xf32>
    %106 = vector.broadcast %105 : vector<16x16x1xf32> to vector<16x16x16xf32>
    %107 = arith.subf %103, %106 : vector<16x16x16xf32>
    %108 = math.exp %107 : vector<16x16x16xf32>
    %cst_5 = arith.constant dense<0.000000e+00> : vector<16x16xf32>
    %109 = vector.multi_reduction <add>, %108, %cst_5 [2] : vector<16x16x16xf32> to vector<16x16xf32>
    %110 = vector.shape_cast %109 : vector<16x16xf32> to vector<16x16x1xf32>
    %111 = tpu.reciprocal %110 {approx = true} : vector<16x16x1xf32> -> vector<16x16x1xf32>
    %112 = vector.broadcast %111 : vector<16x16x1xf32> to vector<16x16x16xf32>
    %113 = arith.mulf %108, %112 : vector<16x16x16xf32>
    %114 = arith.truncf %113 : vector<16x16x16xf32> to vector<16x16x16xbf16>
    %cst_6 = arith.constant dense<0.000000e+00> : vector<16x16x4xf32>
    %115 = tpu.matmul %114, %102, %cst_6 {dimension_numbers = #tpu.dot_dimension_numbers<[2], [1], [1], [2], [0, 0, 0, 1, 1, 2], [0], [0]>} : vector<16x16x16xbf16>, vector<16x16x4xbf16>, vector<16x16x4xf32> -> vector<16x16x4xf32>
    %116 = vector.extract_strided_slice %115 {offsets = [0, 0, 0], sizes = [1, 16, 4], strides = [1, 1, 1]} : vector<16x16x4xf32> to vector<1x16x4xf32>
    %117 = vector.shape_cast %116 : vector<1x16x4xf32> to vector<16x4xf32>
    %c0_7 = arith.constant 0 : index
    %c0_8 = arith.constant 0 : index
    %118 = vector.load %arg6[%c0_7, %c0_8] : memref<32x32xf32, #tpu.memory_space<vmem>>, vector<16x4xf32>
    tpu.vector_store %arg6[%c0_7, %c0_8], %117 {strides = array<i32>} : memref<32x32xf32, #tpu.memory_space<vmem>>, vector<16x4xf32>,
    %119 = vector.extract_strided_slice %115 {offsets = [1, 0, 0], sizes = [1, 16, 4], strides = [1, 1, 1]} : vector<16x16x4xf32> to vector<1x16x4xf32>
    %120 = vector.shape_cast %119 : vector<1x16x4xf32> to vector<16x4xf32>
    %c0_9 = arith.constant 0 : index
    %c4 = arith.constant 4 : index
    %121 = vector.load %arg6[%c0_9, %c4] : memref<32x32xf32, #tpu.memory_space<vmem>>, vector<16x4xf32>
    tpu.vector_store %arg6[%c0_9, %c4], %120 {strides = array<i32>} : memref<32x32xf32, #tpu.memory_space<vmem>>, vector<16x4xf32>,
    %122 = vector.extract_strided_slice %115 {offsets = [2, 0, 0], sizes = [1, 16, 4], strides = [1, 1, 1]} : vector<16x16x4xf32> to vector<1x16x4xf32>
    %123 = vector.shape_cast %122 : vector<1x16x4xf32> to vector<16x4xf32>
    %c0_10 = arith.constant 0 : index
    %c8 = arith.constant 8 : index
    %124 = vector.load %arg6[%c0_10, %c8] : memref<32x32xf32, #tpu.memory_space<vmem>>, vector<16x4xf32>
    tpu.vector_store %arg6[%c0_10, %c8], %123 {strides = array<i32>} : memref<32x32xf32, #tpu.memory_space<vmem>>, vector<16x4xf32>,
    %125 = vector.extract_strided_slice %115 {offsets = [3, 0, 0], sizes = [1, 16, 4], strides = [1, 1, 1]} : vector<16x16x4xf32> to vector<1x16x4xf32>
    %126 = vector.shape_cast %125 : vector<1x16x4xf32> to vector<16x4xf32>
    %c0_11 = arith.constant 0 : index
    %c12 = arith.constant 12 : index
    %127 = vector.load %arg6[%c0_11, %c12] : memref<32x32xf32, #tpu.memory_space<vmem>>, vector<16x4xf32>
    tpu.vector_store %arg6[%c0_11, %c12], %126 {strides = array<i32>} : memref<32x32xf32, #tpu.memory_space<vmem>>, vector<16x4xf32>,
    %128 = vector.extract_strided_slice %115 {offsets = [4, 0, 0], sizes = [1, 16, 4], strides = [1, 1, 1]} : vector<16x16x4xf32> to vector<1x16x4xf32>
    %129 = vector.shape_cast %128 : vector<1x16x4xf32> to vector<16x4xf32>
    %c0_12 = arith.constant 0 : index
    %c16 = arith.constant 16 : index
    %130 = vector.load %arg6[%c0_12, %c16] : memref<32x32xf32, #tpu.memory_space<vmem>>, vector<16x4xf32>
    tpu.vector_store %arg6[%c0_12, %c16], %129 {strides = array<i32>} : memref<32x32xf32, #tpu.memory_space<vmem>>, vector<16x4xf32>,
    %131 = vector.extract_strided_slice %115 {offsets = [5, 0, 0], sizes = [1, 16, 4], strides = [1, 1, 1]} : vector<16x16x4xf32> to vector<1x16x4xf32>
    %132 = vector.shape_cast %131 : vector<1x16x4xf32> to vector<16x4xf32>
    %c0_13 = arith.constant 0 : index
    %c20 = arith.constant 20 : index
    %133 = vector.load %arg6[%c0_13, %c20] : memref<32x32xf32, #tpu.memory_space<vmem>>, vector<16x4xf32>
    tpu.vector_store %arg6[%c0_13, %c20], %132 {strides = array<i32>} : memref<32x32xf32, #tpu.memory_space<vmem>>, vector<16x4xf32>,
    %134 = vector.extract_strided_slice %115 {offsets = [6, 0, 0], sizes = [1, 16, 4], strides = [1, 1, 1]} : vector<16x16x4xf32> to vector<1x16x4xf32>
    %135 = vector.shape_cast %134 : vector<1x16x4xf32> to vector<16x4xf32>
    %c0_14 = arith.constant 0 : index
    %c24 = arith.constant 24 : index
    %136 = vector.load %arg6[%c0_14, %c24] : memref<32x32xf32, #tpu.memory_space<vmem>>, vector<16x4xf32>
    tpu.vector_store %arg6[%c0_14, %c24], %135 {strides = array<i32>} : memref<32x32xf32, #tpu.memory_space<vmem>>, vector<16x4xf32>,
    %137 = vector.extract_strided_slice %115 {offsets = [7, 0, 0], sizes = [1, 16, 4], strides = [1, 1, 1]} : vector<16x16x4xf32> to vector<1x16x4xf32>
    %138 = vector.shape_cast %137 : vector<1x16x4xf32> to vector<16x4xf32>
    %c0_15 = arith.constant 0 : index
    %c28 = arith.constant 28 : index
    %139 = vector.load %arg6[%c0_15, %c28] : memref<32x32xf32, #tpu.memory_space<vmem>>, vector<16x4xf32>
    tpu.vector_store %arg6[%c0_15, %c28], %138 {strides = array<i32>} : memref<32x32xf32, #tpu.memory_space<vmem>>, vector<16x4xf32>,
    %140 = vector.extract_strided_slice %115 {offsets = [8, 0, 0], sizes = [1, 16, 4], strides = [1, 1, 1]} : vector<16x16x4xf32> to vector<1x16x4xf32>
    %141 = vector.shape_cast %140 : vector<1x16x4xf32> to vector<16x4xf32>
    %c16_16 = arith.constant 16 : index
    %c0_17 = arith.constant 0 : index
    %142 = vector.load %arg6[%c16_16, %c0_17] : memref<32x32xf32, #tpu.memory_space<vmem>>, vector<16x4xf32>
    tpu.vector_store %arg6[%c16_16, %c0_17], %141 {strides = array<i32>} : memref<32x32xf32, #tpu.memory_space<vmem>>, vector<16x4xf32>,
    %143 = vector.extract_strided_slice %115 {offsets = [9, 0, 0], sizes = [1, 16, 4], strides = [1, 1, 1]} : vector<16x16x4xf32> to vector<1x16x4xf32>
    %144 = vector.shape_cast %143 : vector<1x16x4xf32> to vector<16x4xf32>
    %c16_18 = arith.constant 16 : index
    %c4_19 = arith.constant 4 : index
    %145 = vector.load %arg6[%c16_18, %c4_19] : memref<32x32xf32, #tpu.memory_space<vmem>>, vector<16x4xf32>
    tpu.vector_store %arg6[%c16_18, %c4_19], %144 {strides = array<i32>} : memref<32x32xf32, #tpu.memory_space<vmem>>, vector<16x4xf32>,
    %146 = vector.extract_strided_slice %115 {offsets = [10, 0, 0], sizes = [1, 16, 4], strides = [1, 1, 1]} : vector<16x16x4xf32> to vector<1x16x4xf32>
    %147 = vector.shape_cast %146 : vector<1x16x4xf32> to vector<16x4xf32>
    %c16_20 = arith.constant 16 : index
    %c8_21 = arith.constant 8 : index
    %148 = vector.load %arg6[%c16_20, %c8_21] : memref<32x32xf32, #tpu.memory_space<vmem>>, vector<16x4xf32>
    tpu.vector_store %arg6[%c16_20, %c8_21], %147 {strides = array<i32>} : memref<32x32xf32, #tpu.memory_space<vmem>>, vector<16x4xf32>,
    %149 = vector.extract_strided_slice %115 {offsets = [11, 0, 0], sizes = [1, 16, 4], strides = [1, 1, 1]} : vector<16x16x4xf32> to vector<1x16x4xf32>
    %150 = vector.shape_cast %149 : vector<1x16x4xf32> to vector<16x4xf32>
    %c16_22 = arith.constant 16 : index
    %c12_23 = arith.constant 12 : index
    %151 = vector.load %arg6[%c16_22, %c12_23] : memref<32x32xf32, #tpu.memory_space<vmem>>, vector<16x4xf32>
    tpu.vector_store %arg6[%c16_22, %c12_23], %150 {strides = array<i32>} : memref<32x32xf32, #tpu.memory_space<vmem>>, vector<16x4xf32>,
    %152 = vector.extract_strided_slice %115 {offsets = [12, 0, 0], sizes = [1, 16, 4], strides = [1, 1, 1]} : vector<16x16x4xf32> to vector<1x16x4xf32>
    %153 = vector.shape_cast %152 : vector<1x16x4xf32> to vector<16x4xf32>
    %c16_24 = arith.constant 16 : index
    %c16_25 = arith.constant 16 : index
    %154 = vector.load %arg6[%c16_24, %c16_25] : memref<32x32xf32, #tpu.memory_space<vmem>>, vector<16x4xf32>
    tpu.vector_store %arg6[%c16_24, %c16_25], %153 {strides = array<i32>} : memref<32x32xf32, #tpu.memory_space<vmem>>, vector<16x4xf32>,
    %155 = vector.extract_strided_slice %115 {offsets = [13, 0, 0], sizes = [1, 16, 4], strides = [1, 1, 1]} : vector<16x16x4xf32> to vector<1x16x4xf32>
    %156 = vector.shape_cast %155 : vector<1x16x4xf32> to vector<16x4xf32>
    %c16_26 = arith.constant 16 : index
    %c20_27 = arith.constant 20 : index
    %157 = vector.load %arg6[%c16_26, %c20_27] : memref<32x32xf32, #tpu.memory_space<vmem>>, vector<16x4xf32>
    tpu.vector_store %arg6[%c16_26, %c20_27], %156 {strides = array<i32>} : memref<32x32xf32, #tpu.memory_space<vmem>>, vector<16x4xf32>,
    %158 = vector.extract_strided_slice %115 {offsets = [14, 0, 0], sizes = [1, 16, 4], strides = [1, 1, 1]} : vector<16x16x4xf32> to vector<1x16x4xf32>
    %159 = vector.shape_cast %158 : vector<1x16x4xf32> to vector<16x4xf32>
    %c16_28 = arith.constant 16 : index
    %c24_29 = arith.constant 24 : index
    %160 = vector.load %arg6[%c16_28, %c24_29] : memref<32x32xf32, #tpu.memory_space<vmem>>, vector<16x4xf32>
    tpu.vector_store %arg6[%c16_28, %c24_29], %159 {strides = array<i32>} : memref<32x32xf32, #tpu.memory_space<vmem>>, vector<16x4xf32>,
    %161 = vector.extract_strided_slice %115 {offsets = [15, 0, 0], sizes = [1, 16, 4], strides = [1, 1, 1]} : vector<16x16x4xf32> to vector<1x16x4xf32>
    %162 = vector.shape_cast %161 : vector<1x16x4xf32> to vector<16x4xf32>
    %c16_30 = arith.constant 16 : index
    %c28_31 = arith.constant 28 : index
    %163 = vector.load %arg6[%c16_30, %c28_31] : memref<32x32xf32, #tpu.memory_space<vmem>>, vector<16x4xf32>
    tpu.vector_store %arg6[%c16_30, %c28_31], %162 {strides = array<i32>} : memref<32x32xf32, #tpu.memory_space<vmem>>, vector<16x4xf32>,
    %c0_32 = arith.constant 0 : index
    %c0_33 = arith.constant 0 : index
    %164 = vector.load %arg6[%c0_32, %c0_33] : memref<32x32xf32, #tpu.memory_space<vmem>>, vector<32x32xf32>
    %165 = arith.truncf %164 : vector<32x32xf32> to vector<32x32xbf16>
    %c0_34 = arith.constant 0 : index
    %c0_35 = arith.constant 0 : index
    %166 = vector.load %arg3[%c0_34, %c0_35] : memref<32x32xbf16, #tpu.memory_space<vmem>>, vector<32x32xbf16>
    %cst_36 = arith.constant dense<0.000000e+00> : vector<32x32xf32>
    %167 = tpu.matmul %165, %166, %cst_36 {dimension_numbers = #tpu.dot_dimension_numbers<[1], [0], [0], [1], [0, 0, 1, 1], [], []>} : vector<32x32xbf16>, vector<32x32xbf16>, vector<32x32xf32> -> vector<32x32xf32>
    %c0_37 = arith.constant 0 : index
    %c0_38 = arith.constant 0 : index
    %168 = vector.load %arg4[%c0_37, %c0_38] : memref<1x32xf32, #tpu.memory_space<vmem>>, vector<1x32xf32>
    %169 = vector.broadcast %168 : vector<1x32xf32> to vector<32x32xf32>
    %170 = arith.addf %167, %169 : vector<32x32xf32>
    %c0_39 = arith.constant 0 : index
    %c0_40 = arith.constant 0 : index
    %171 = vector.load %arg5[%c0_39, %c0_40] : memref<32x32xf32, #tpu.memory_space<vmem>>, vector<32x32xf32>
    tpu.vector_store %arg5[%c0_39, %c0_40], %170 {strides = array<i32>} : memref<32x32xf32, #tpu.memory_space<vmem>>, vector<32x32xf32>,
    return
  }
  func.func @transform_0(%arg0: i32) -> (i32, i32) {
    %c0_i32 = arith.constant 0 : i32
    %c0_i32_0 = arith.constant 0 : i32
    return %arg0, %c0_i32 : i32, i32
  }
  func.func @transform_1(%arg0: i32) -> (i32, i32) {
    %c0_i32 = arith.constant 0 : i32
    %c0_i32_0 = arith.constant 0 : i32
    %c0_i32_1 = arith.constant 0 : i32
    return %c0_i32, %c0_i32_0 : i32, i32
  }
  func.func @transform_2(%arg0: i32) -> (i32, i32) {
    %c0_i32 = arith.constant 0 : i32
    %c0_i32_0 = arith.constant 0 : i32
    %c0_i32_1 = arith.constant 0 : i32
    return %c0_i32, %c0_i32_0 : i32, i32
  }
  func.func @transform_3(%arg0: i32) -> (i32, i32) {
    %c0_i32 = arith.constant 0 : i32
    %c0_i32_0 = arith.constant 0 : i32
    %c0_i32_1 = arith.constant 0 : i32
    return %c0_i32, %c0_i32_0 : i32, i32
  }
  func.func @transform_4(%arg0: i32) -> (i32, i32) {
    %c0_i32 = arith.constant 0 : i32
    %c0_i32_0 = arith.constant 0 : i32
    return %arg0, %c0_i32 : i32, i32
  }
}

</mosaic_0001>

<bundles_post_ra>
// kernel: tpu_custom_call.1
= control target key start
LH: loop header
LB: loop body
LE: loop exit
PB: predicated region body
PF: predicated region fallthrough
CT: control target
= control target key end

     0   :  { %9 = vsyncpa [#allocation4], 0  ;;  %s3715_s0 = inlined_call_operand.hbm [shape: bf16[32,32], index: 0, kind: input, shape index: {}]   ;;  %s3716_s1 = inlined_call_operand.hbm [shape: bf16[32,96], index: 1, kind: input, shape index: {}]   ;;  %s3717_s2 = inlined_call_operand.hbm [shape: bf16[32,32], index: 2, kind: input, shape index: {}]   ;;  %s3718_s3 = inlined_call_operand.vmem [shape: f32[1,32], index: 3, kind: input, shape index: {}]   ;;  %s3719_s4 = inlined_call_operand.hbm [shape: f32[32,32], index: 4, kind: output, shape index: {}]  }
   0x1   :  { %10 = vsyncpa [#allocation7], 0 }
   0x2   :  { %11 = vsyncpa [#allocation5], 0  ;;  %s2915_s15 = smov [#allocation6]   ;;  %s2916_s17 = smov [#allocation3]  }
   0x3   :  { %s29_s16 = sshll.u32 %s2915_s15, 4  ;;  %s17_s18 = sshll.u32 %s2916_s17, 4  ;;  %s30_s16 = int_to_ptr.vmem [resolvable:$true] %s29_s16  ;;  %s2963_s18 = int_to_ptr.vmem [resolvable:$true] %s17_s18 }
   0x4   :  { %s2821_s21 = scalar_lea.hbm %s3716_s1, 256 }
   0x5   :  { %p2822_p0 = scmp.ne.s32.totalorder %s3716_s1, %s2821_s21  ;;  %p2825_p1 = scmp.lt.u32.totalorder %s2821_s21, %s3716_s1 }
   0x7   :  { %p2827_p2 = pnand %p2825_p1, %p2822_p0 }
   0x9   :  { %2830 = shalt.err (!%p2827_p2)
}
   0xa   :  { %s2831_s26 = scalar_lea.vmem %s30_s16, 256  ;;  %p2836_p4 = scmp.lt.s32.totalorder %s30_s16, %s30_s16 }
   0xb   :  { %p2832_p3 = scmp.ne.s32.totalorder %s30_s16, %s2831_s26  ;;  %p2837_p5 = scmp.lt.s32.totalorder %s2831_s26, %s2831_s26 }
   0xd   :  { %p2838_p6 = por %p2837_p5, %p2836_p4 }
   0xf   :  { %p2839_p7 = pnand %p2838_p6, %p2832_p3 }
  0x11   :  { %2842 = shalt.err (!%p2839_p7)
}
  0x12   :  { %s2917_s27 = smov 64   ;;  %s2918_s28 = smov 4  }
  0x13   :  { %35 = dma.hbm_to_vmem [thread:$0]  %s3716_s1, 256, %s30_s16, [#allocation7], %s2917_s27, %s2917_s27, %s2918_s28  }
  0x14   :  { %s2843_s7 = scalar_lea.hbm %s3715_s0, 256 }
  0x15   :  { %p2844_p8 = scmp.ne.s32.totalorder %s3715_s0, %s2843_s7  ;;  %p2847_p9 = scmp.lt.u32.totalorder %s2843_s7, %s3715_s0 }
  0x17   :  { %p2849_p10 = pnand %p2847_p9, %p2844_p8 }
  0x19   :  { %2852 = shalt.err (!%p2849_p10)
}
  0x1a   :  { %s2853_s12 = scalar_lea.vmem %s2963_s18, 256  ;;  %p2858_p12 = scmp.lt.s32.totalorder %s2963_s18, %s2963_s18 }
  0x1b   :  { %p2854_p11 = scmp.ne.s32.totalorder %s2963_s18, %s2853_s12  ;;  %p2859_p13 = scmp.lt.s32.totalorder %s2853_s12, %s2853_s12 }
  0x1d   :  { %p2860_p0 = por %p2859_p13, %p2858_p12 }
  0x1f   :  { %p2861_p1 = pnand %p2860_p0, %p2854_p11 }
  0x21   :  { %2864 = shalt.err (!%p2861_p1)
}
  0x22   :  { %23 = dma.hbm_to_vmem [thread:$0]  %s3715_s0, 256, %s2963_s18, [#allocation4], %s2917_s27, %s2917_s27, %s2918_s28  }
  0x23   :  { %s2919_s14 = smov [#allocation8]   ;;  %s2865_s19 = scalar_lea.hbm %s3717_s2, 256 }
  0x24   :  { %s41_s15 = sshll.u32 %s2919_s14, 4  ;;  %p2866_p2 = scmp.ne.s32.totalorder %s3717_s2, %s2865_s19  ;;  %s42_s15 = int_to_ptr.vmem [resolvable:$true] %s41_s15 }
  0x25   :  { %p2869_p3 = scmp.lt.u32.totalorder %s2865_s19, %s3717_s2 }
  0x27   :  { %p2871_p4 = pnand %p2869_p3, %p2866_p2 }
  0x29   :  { %2874 = shalt.err (!%p2871_p4)
}
  0x2a   :  { %s2875_s24 = scalar_lea.vmem %s42_s15, 256  ;;  %p2880_p6 = scmp.lt.s32.totalorder %s42_s15, %s42_s15 }
  0x2b   :  { %p2876_p5 = scmp.ne.s32.totalorder %s42_s15, %s2875_s24  ;;  %p2881_p7 = scmp.lt.s32.totalorder %s2875_s24, %s2875_s24 }
  0x2d   :  { %p2882_p8 = por %p2881_p7, %p2880_p6 }
  0x2f   :  { %p2883_p9 = pnand %p2882_p8, %p2876_p5 }
  0x31   :  { %2886 = shalt.err (!%p2883_p9)
}
  0x32   :  { %47 = dma.hbm_to_vmem [thread:$0]  %s3717_s2, 256, %s42_s15, [#allocation7], %s2917_s27, %s2917_s27, %s2918_s28  }
  0x33   :  { %2909 = dma.done.wait [#allocation4], 256  }
  0x34   :  { %2910 = vsyncadd [#allocation4], 4294967040 }
  0x35   :  { %2911 = dma.done.wait [#allocation7], 512  }
  0x36   :  { %2912 = vsyncadd [#allocation7], 4294966784  ;;  %v2687_v0 = vld [vmem:[#allocation6] sm:$0xff]   ;;  %v2688_v1 = vld [vmem:[#allocation6 + $0x8] sm:$0xff]   ;;  %vm90_vm0 = vcmask 261120   ;;  %s2920_s2 = smov 116  }
  0x37   :  { %2456 = vmatprep.subr.bf16.mxu0 %v2687_v0  ;;  %v2689_v2 = vld [vmem:[#allocation3] sm:$0xff]   ;;  %v2690_v3 = vld [vmem:[#allocation3 + $0x8] sm:$0xff]   ;;  %s2921_s25 = smov 124   ;;  %s2922_s26 = smov 112   ;;  %v2927_v10 = vmov 0.0   ;;  %vm2928_vm1 = vmmov 0  }
  0x38   :  { %2457 = vmatpush3.bf16.msra.mxu0 %v2687_v0  ;;  %2460 = vmatprep.mubr.msk.bf16.mxu0 %vm90_vm0, %v2689_v2  ;;  %s2923_s29 = smov 120   ;;  %s2924_s30 = smov 104   ;;  %vm180_vm2 = vcmask 31744   ;;  %vm963_vm3 = vcmask 130048   ;;  %vm2094_vm4 = vcmask 64544   ;;  %vm2105_vm5 = vcmask 97344  }
  0x39   :  { %2458 = vmatprep.subr.bf16.mxu0 %v2688_v1  ;;  %s2925_s5 = smov 108   ;;  %s2926_s6 = smov 100   ;;  %2464 = vmatprep.subr.bf16.mxu1 %v2927_v10  ;;  %vm2116_vm6 = vcmask 130144   ;;  %vm2127_vm7 = vcmask 162944   ;;  %vm2138_vm8 = vcmask 195744   ;;  %vm2149_vm9 = vcmask 228544  }
  0x3a   :  { %2466 = vmatprep.mubr.msk.bf16.mxu1 %vm2928_vm1, %v2927_v10  ;;  %s2929_s7 = smov 96   ;;  %s2931_s8 = smov 12   ;;  %vm2160_vm10 = vcmask 261344  }
  0x3b   :  { %s2932_s9 = smov 16   ;;  %s2933_s10 = smov 20  }
  0x3c   :  { %2459 = vmatpush3.bf16.msra.mxu0 %v2688_v1  ;;  %s2934_s11 = smov 24   ;;  %s2935_s12 = smov 28  }
  0x3d   :  { %2470 = vmatprep.subr.bf16.mxu0 %v2927_v10  ;;  %s2936_s13 = smov [#allocation9]  }
  0x3e   :  { %s2328_s14 = sshll.u32 %s2936_s13, 4  ;;  %s2329_s14 = int_to_ptr.vmem [resolvable:$true] %s2328_s14 }
  0x3f   :  { %2461 = vmatmul.mubr.msk.bf16.vlgmr.msra.gmra.mrb[0].mxu0 %vm90_vm0, %v2690_v3  ;;  %p2892_p11 = scmp.lt.s32.totalorder %s2329_s14, %s2329_s14 }
  0x40   :  { %2472 = vmatprep.mubr.msk.bf16.mxu0 %vm2928_vm1, %v2927_v10 }
 0x112   :  { %v2462_v4 = vpop.f32.mrb[0].mxu0 }
 0x113   :  { %v131_v5 = vpop.f32.mrb[1].mxu0 }
 0x114   :  { %v2463_v6 = vpop.f32.mrb[2].mxu0 }
 0x115   :  { %v3017_v7 = vpack.c.bf16 %v2463_v6, %v2462_v4  ;;  %v134_v8 = vpop.f32.mrb[3].mxu0 }
 0x116   :  { %v3019_v9 = vpack.c.bf16 %v134_v8, %v131_v5 }
 0x118   :  { %153 = vrot.lane.b32.xlu1 %v3019_v9, %s2920_s2  ;;  %149 = vrot.lane.b32.xlu0 %v3019_v9, %s2921_s25 }
 0x11c   :  { %155 = vrot.lane.b32.xlu1 %v3019_v9, %s2922_s26  ;;  %151 = vrot.lane.b32.xlu0 %v3019_v9, %s2923_s29 }
 0x120   :  { %159 = vrot.lane.b32.xlu1 %v3019_v9, %s2924_s30  ;;  %157 = vrot.lane.b32.xlu0 %v3019_v9, %s2925_s5 }
 0x124   :  { %164 = vrot.lane.b32.xlu1 %v3017_v7, %s2921_s25  ;;  %161 = vrot.lane.b32.xlu0 %v3019_v9, %s2926_s6 }
 0x128   :  { %168 = vrot.lane.b32.xlu1 %v3017_v7, %s2920_s2  ;;  %166 = vrot.lane.b32.xlu0 %v3017_v7, %s2923_s29 }
 0x12c   :  { %172 = vrot.lane.b32.xlu1 %v3017_v7, %s2925_s5  ;;  %170 = vrot.lane.b32.xlu0 %v3017_v7, %s2922_s26 }
 0x130   :  { %176 = vrot.lane.b32.xlu1 %v3017_v7, %s2926_s6  ;;  %174 = vrot.lane.b32.xlu0 %v3017_v7, %s2924_s30 }
 0x134   :  { %178 = vrot.lane.b32.xlu0 %v3019_v9, %s2929_s7 }
 0x18a   :  { %v3043_v11 = vpop.permute.xlu1 %153  ;;  %v150_v12 = vpop.permute.xlu0 %149 }
 0x18b   :  { %228 = vrot.lane.b32.xlu1 %v150_v12, %s2929_s7 }
 0x18e   :  { %v3046_v13 = vpop.permute.xlu1 %155  ;;  %v152_v14 = vpop.permute.xlu0 %151 }
 0x18f   :  { %326 = vrot.lane.b32.xlu1 %v3043_v11, %s2929_s7  ;;  %277 = vrot.lane.b32.xlu0 %v152_v14, %s2929_s7 }
 0x192   :  { %v3051_v15 = vpop.permute.xlu1 %159  ;;  %v3053_v16 = vpop.permute.xlu0 %157 }
 0x193   :  { %375 = vrot.lane.b32.xlu0 %v3046_v13, %s2929_s7  ;;  %424 = vrot.lane.b32.xlu1 %v3053_v16, %s2929_s7 }
 0x196   :  { %v3059_v17 = vpop.permute.xlu1 %164  ;;  %v3061_v18 = vpop.permute.xlu0 %161 }
 0x197   :  { %473 = vrot.lane.b32.xlu0 %v3051_v15, %s2929_s7  ;;  %522 = vrot.lane.b32.xlu1 %v3061_v18, %s2929_s7 }
 0x19a   :  { %v3067_v19 = vpop.permute.xlu1 %168  ;;  %v3069_v20 = vpop.permute.xlu0 %166 }
 0x19b   :  { %571 = vrot.lane.b32.xlu0 %v3017_v7, %s2929_s7  ;;  %620 = vrot.lane.b32.xlu1 %v3059_v17, %s2929_s7 }
 0x19e   :  { %v3075_v21 = vpop.permute.xlu0 %170  ;;  %v3081_v22 = vpop.permute.xlu1 %172 }
 0x19f   :  { %718 = vrot.lane.b32.xlu1 %v3067_v19, %s2929_s7  ;;  %669 = vrot.lane.b32.xlu0 %v3069_v20, %s2929_s7 }
 0x1a2   :  { %v3083_v23 = vpop.permute.xlu0 %174  ;;  %v3089_v24 = vpop.permute.xlu1 %176 }
 0x1a3   :  { %816 = vrot.lane.b32.xlu1 %v3081_v22, %s2929_s7  ;;  %767 = vrot.lane.b32.xlu0 %v3075_v21, %s2929_s7 }
 0x1a6   :  { %v179_v25 = vpop.permute.xlu0 %178 }
 0x1a7   :  { %914 = vrot.lane.b32.xlu1 %v3089_v24, %s2929_s7  ;;  %865 = vrot.lane.b32.xlu0 %v3083_v23, %s2929_s7  ;;  %v185_v26 = vsel %vm180_vm2, %v179_v25, 0 }
 0x1a8   :  { %2465 = vmatpush3.bf16.xpose.msra.mxu1 %v185_v26 }
 0x1a9   :  { %2476 = vmatprep.subr.bf16.mxu1 %v2927_v10 }
 0x1ab   :  { %1332 = vrot.lane.b32.xlu1 %v3019_v9, %s2917_s27  ;;  %1755 = vrot.lane.b32.xlu0 %v3059_v17, %s2917_s27 }
 0x1af   :  { %1708 = vrot.lane.b32.xlu1 %v3017_v7, %s2917_s27  ;;  %1379 = vrot.lane.b32.xlu0 %v150_v12, %s2917_s27 }
 0x1b0   :  { %2467 = vmatmul.mubr.msk.bf16.vlgmr.msra.gmra.mrb[0].mxu1 %vm180_vm2, %v3019_v9 }
 0x1b1   :  { %2478 = vmatprep.mubr.msk.bf16.mxu1 %vm2928_vm1, %v2927_v10 }
 0x1b3   :  { %1802 = vrot.lane.b32.xlu1 %v3069_v20, %s2917_s27  ;;  %1473 = vrot.lane.b32.xlu0 %v3043_v11, %s2917_s27 }
 0x1b7   :  { %1849 = vrot.lane.b32.xlu1 %v3067_v19, %s2917_s27  ;;  %1567 = vrot.lane.b32.xlu0 %v3053_v16, %s2917_s27 }
 0x1bb   :  { %1426 = vrot.lane.b32.xlu1 %v152_v14, %s2917_s27  ;;  %1661 = vrot.lane.b32.xlu0 %v3061_v18, %s2917_s27 }
 0x1bf   :  { %1520 = vrot.lane.b32.xlu1 %v3046_v13, %s2917_s27 }
 0x1c3   :  { %1614 = vrot.lane.b32.xlu1 %v3051_v15, %s2917_s27 }
 0x1fd   :  { %v229_v27 = vpop.permute.xlu1 %228 }
 0x1fe   :  { %v234_v28 = vsel %vm180_vm2, %v229_v27, 0 }
 0x1ff   :  { %2471 = vmatpush3.bf16.xpose.msra.mxu0 %v234_v28 }
 0x200   :  { %2482 = vmatprep.subr.bf16.mxu0 %v2927_v10 }
 0x201   :  { %v278_v29 = vpop.permute.xlu0 %277  ;;  %v327_v31 = vpop.permute.xlu1 %326 }
 0x202   :  { %v283_v30 = vsel %vm180_vm2, %v278_v29, 0  ;;  %v332_v32 = vsel %vm180_vm2, %v327_v31, 0 }
 0x203   :  { %2477 = vmatpush3.bf16.xpose.msra.mxu1 %v283_v30 }
 0x204   :  { %2488 = vmatprep.subr.bf16.mxu1 %v2927_v10 }
 0x205   :  { %v376_v33 = vpop.permute.xlu0 %375  ;;  %v425_v35 = vpop.permute.xlu1 %424 }
 0x206   :  { %2473 = vmatmul.mubr.msk.bf16.vlgmr.msra.gmra.mrb[4].mxu0 %vm180_vm2, %v150_v12  ;;  %v381_v34 = vsel %vm180_vm2, %v376_v33, 0  ;;  %v430_v36 = vsel %vm180_vm2, %v425_v35, 0 }
 0x207   :  { %2483 = vmatpush3.bf16.xpose.msra.mxu0 %v332_v32  ;;  %2484 = vmatprep.mubr.msk.bf16.mxu0 %vm2928_vm1, %v2927_v10 }
 0x208   :  { %2494 = vmatprep.subr.bf16.mxu0 %v2927_v10 }
 0x209   :  { %v474_v37 = vpop.permute.xlu0 %473  ;;  %v523_v39 = vpop.permute.xlu1 %522 }
 0x20a   :  { %2479 = vmatmul.mubr.msk.bf16.vlgmr.msra.gmra.mrb[4].mxu1 %vm180_vm2, %v152_v14  ;;  %v479_v38 = vsel %vm180_vm2, %v474_v37, 0  ;;  %v528_v40 = vsel %vm180_vm2, %v523_v39, 0 }
 0x20b   :  { %2489 = vmatpush3.bf16.xpose.msra.mxu1 %v381_v34  ;;  %2490 = vmatprep.mubr.msk.bf16.mxu1 %vm2928_vm1, %v2927_v10 }
 0x20c   :  { %2500 = vmatprep.subr.bf16.mxu1 %v2927_v10 }
 0x20d   :  { %v572_v41 = vpop.permute.xlu0 %571  ;;  %v621_v43 = vpop.permute.xlu1 %620 }
 0x20e   :  { %2485 = vmatmul.mubr.msk.bf16.vlgmr.msra.gmra.mrb[8].mxu0 %vm180_vm2, %v3043_v11  ;;  %v577_v42 = vsel %vm180_vm2, %v572_v41, 0  ;;  %v626_v44 = vsel %vm180_vm2, %v621_v43, 0 }
 0x20f   :  { %2495 = vmatpush3.bf16.xpose.msra.mxu0 %v430_v36  ;;  %2496 = vmatprep.mubr.msk.bf16.mxu0 %vm2928_vm1, %v2927_v10 }
 0x210   :  { %2506 = vmatprep.subr.bf16.mxu0 %v2927_v10 }
 0x211   :  { %v670_v45 = vpop.permute.xlu0 %669  ;;  %v719_v47 = vpop.permute.xlu1 %718 }
 0x212   :  { %2491 = vmatmul.mubr.msk.bf16.vlgmr.msra.gmra.mrb[8].mxu1 %vm180_vm2, %v3046_v13  ;;  %v675_v46 = vsel %vm180_vm2, %v670_v45, 0  ;;  %v724_v48 = vsel %vm180_vm2, %v719_v47, 0 }
 0x213   :  { %2501 = vmatpush3.bf16.xpose.msra.mxu1 %v479_v38  ;;  %2502 = vmatprep.mubr.msk.bf16.mxu1 %vm2928_vm1, %v2927_v10 }
 0x214   :  { %2512 = vmatprep.subr.bf16.mxu1 %v2927_v10 }
 0x215   :  { %v768_v49 = vpop.permute.xlu0 %767  ;;  %v817_v51 = vpop.permute.xlu1 %816 }
 0x216   :  { %2497 = vmatmul.mubr.msk.bf16.vlgmr.msra.gmra.mrb[12].mxu0 %vm180_vm2, %v3053_v16  ;;  %v773_v50 = vsel %vm180_vm2, %v768_v49, 0  ;;  %v822_v52 = vsel %vm180_vm2, %v817_v51, 0 }
 0x217   :  { %2507 = vmatpush3.bf16.xpose.msra.mxu0 %v528_v40  ;;  %2508 = vmatprep.mubr.msk.bf16.mxu0 %vm2928_vm1, %v2927_v10 }
 0x218   :  { %2518 = vmatprep.subr.bf16.mxu0 %v2927_v10 }
 0x219   :  { %v866_v53 = vpop.permute.xlu0 %865  ;;  %v915_v55 = vpop.permute.xlu1 %914 }
 0x21a   :  { %2503 = vmatmul.mubr.msk.bf16.vlgmr.msra.gmra.mrb[12].mxu1 %vm180_vm2, %v3051_v15  ;;  %v871_v54 = vsel %vm180_vm2, %v866_v53, 0  ;;  %v920_v56 = vsel %vm180_vm2, %v915_v55, 0 }
 0x21b   :  { %2513 = vmatpush3.bf16.xpose.msra.mxu1 %v577_v42  ;;  %2514 = vmatprep.mubr.msk.bf16.mxu1 %vm2928_vm1, %v2927_v10 }
 0x21c   :  { %2524 = vmatprep.subr.bf16.mxu1 %v2927_v10 }
 0x21d   :  { %v3202_v57 = vpop.permute.xlu0 %1755  ;;  %v1333_v58 = vpop.permute.xlu1 %1332 }
 0x21e   :  { %2509 = vmatmul.mubr.msk.bf16.vlgmr.msra.gmra.mrb[16].mxu0 %vm180_vm2, %v3061_v18 }
 0x21f   :  { %2519 = vmatpush3.bf16.xpose.msra.mxu0 %v626_v44  ;;  %2520 = vmatprep.mubr.msk.bf16.mxu0 %vm2928_vm1, %v2927_v10 }
 0x220   :  { %2530 = vmatprep.subr.bf16.mxu0 %v2927_v10 }
 0x221   :  { %v1380_v59 = vpop.permute.xlu0 %1379  ;;  %v3271_v43 = vpop.permute.xlu1 %1708 }
 0x222   :  { %2515 = vmatmul.mubr.msk.bf16.vlgmr.msra.gmra.mrb[16].mxu1 %vm180_vm2, %v3017_v7 }
 0x223   :  { %2525 = vmatpush3.bf16.xpose.msra.mxu1 %v675_v46  ;;  %2526 = vmatprep.mubr.msk.bf16.mxu1 %vm2928_vm1, %v2927_v10 }
 0x224   :  { %2536 = vmatprep.subr.bf16.mxu1 %v2927_v10 }
 0x226   :  { %2521 = vmatmul.mubr.msk.bf16.vlgmr.msra.gmra.mrb[20].mxu0 %vm180_vm2, %v3059_v17 }
 0x227   :  { %2531 = vmatpush3.bf16.xpose.msra.mxu0 %v724_v48  ;;  %2532 = vmatprep.mubr.msk.bf16.mxu0 %vm2928_vm1, %v2927_v10 }
 0x228   :  { %2542 = vmatprep.subr.bf16.mxu0 %v2927_v10 }
 0x22a   :  { %2527 = vmatmul.mubr.msk.bf16.vlgmr.msra.gmra.mrb[20].mxu1 %vm180_vm2, %v3069_v20 }
 0x22b   :  { %2537 = vmatpush3.bf16.xpose.msra.mxu1 %v773_v50  ;;  %2538 = vmatprep.mubr.msk.bf16.mxu1 %vm2928_vm1, %v2927_v10 }
 0x22c   :  { %2548 = vmatprep.subr.bf16.mxu1 %v2927_v10 }
 0x22e   :  { %2533 = vmatmul.mubr.msk.bf16.vlgmr.msra.gmra.mrb[24].mxu0 %vm180_vm2, %v3067_v19 }
 0x22f   :  { %2543 = vmatpush3.bf16.xpose.msra.mxu0 %v822_v52  ;;  %2544 = vmatprep.mubr.msk.bf16.mxu0 %vm2928_vm1, %v2927_v10 }
 0x230   :  { %2554 = vmatprep.subr.bf16.mxu0 %v2927_v10 }
 0x232   :  { %2539 = vmatmul.mubr.msk.bf16.vlgmr.msra.gmra.mrb[24].mxu1 %vm180_vm2, %v3075_v21 }
 0x233   :  { %2549 = vmatpush3.bf16.xpose.msra.mxu1 %v871_v54  ;;  %2550 = vmatprep.mubr.msk.bf16.mxu1 %vm2928_vm1, %v2927_v10  ;;  %v3287_v54 = vpop.permute.xlu1 %1802 }
 0x234   :  { %2560 = vmatprep.subr.bf16.mxu1 %v2927_v10 }
 0x236   :  { %2545 = vmatmul.mubr.msk.bf16.vlgmr.msra.gmra.mrb[28].mxu0 %vm180_vm2, %v3081_v22 }
 0x237   :  { %2555 = vmatpush3.bf16.xpose.msra.mxu0 %v920_v56  ;;  %2556 = vmatprep.mubr.msk.bf16.mxu0 %vm2928_vm1, %v2927_v10 }
 0x238   :  { %2566 = vmatprep.subr.bf16.mxu0 %v2927_v10 }
 0x23a   :  { %2551 = vmatmul.mubr.msk.bf16.vlgmr.msra.gmra.mrb[28].mxu1 %vm180_vm2, %v3083_v23 }
 0x23b   :  { %2561 = vmatpush3.bf16.msra.mxu1 %v1333_v58  ;;  %2562 = vmatprep.mubr.msk.bf16.mxu1 %vm2928_vm1, %v2927_v10 }
 0x23c   :  { %2572 = vmatprep.subr.bf16.mxu1 %v2927_v10 }
 0x23e   :  { %2557 = vmatmul.mubr.msk.bf16.vlgmr.msra.gmra.mrb[32].mxu0 %vm180_vm2, %v3089_v24 }
 0x23f   :  { %2567 = vmatpush3.bf16.msra.mxu0 %v1380_v59  ;;  %2568 = vmatprep.mubr.msk.bf16.mxu0 %vm2928_vm1, %v2927_v10 }
 0x240   :  { %2578 = vmatprep.subr.bf16.mxu0 %v2927_v10 }
 0x283   :  { %v3215_v60 = vpop.f32.mrb[0].mxu1 }
 0x284   :  { %v2468_v61 = vpop.f32.mrb[1].mxu1  ;;  %v964_v62 = vsel %vm963_vm3, %v3215_v60, -inf }
 0x285   :  { %965 = vmax.xlane.f32.xlu0 %v964_v62  ;;  %v3219_v63 = vpop.f32.mrb[2].mxu1 }
 0x286   :  { %v2469_v0 = vpop.f32.mrb[3].mxu1  ;;  %v967_v1 = vsel %vm963_vm3, %v3219_v63, -inf }
 0x287   :  { %968 = vmax.xlane.f32.xlu1 %v967_v1 }
 0x2d9   :  { %v3223_v2 = vpop.f32.mrb[4].mxu0 }
 0x2da   :  { %v2474_v3 = vpop.f32.mrb[5].mxu0  ;;  %v970_v4 = vsel %vm963_vm3, %v3223_v2, -inf }
 0x2db   :  { %v3227_v5 = vpop.f32.mrb[6].mxu0  ;;  %971 = vmax.xlane.f32.xlu0 %v970_v4  ;;  %v3299_v3 = vpop.permute.xlu1 %1849 }
 0x2dc   :  { %v2475_v6 = vpop.f32.mrb[7].mxu0  ;;  %v973_v9 = vsel %vm963_vm3, %v3227_v5, -inf }
 0x2dd   :  { %v3229_v7 = vpop.f32.mrb[4].mxu1 }
 0x2de   :  { %v2480_v8 = vpop.f32.mrb[5].mxu1  ;;  %v976_v11 = vsel %vm963_vm3, %v3229_v7, -inf }
 0x2df   :  { %974 = vmax.xlane.f32.xlu0 %v973_v9  ;;  %977 = vmax.xlane.f32.xlu1 %v976_v11  ;;  %v3235_v12 = vpop.f32.mrb[6].mxu1 }
 0x2e0   :  { %v2481_v13 = vpop.f32.mrb[7].mxu1  ;;  %v979_v17 = vsel %vm963_vm3, %v3235_v12, -inf }
 0x2e1   :  { %v3237_v14 = vpop.f32.mrb[8].mxu0 }
 0x2e2   :  { %v2486_v15 = vpop.f32.mrb[9].mxu0  ;;  %v982_v16 = vsel %vm963_vm3, %v3237_v14, -inf }
 0x2e3   :  { %v3243_v18 = vpop.f32.mrb[10].mxu0  ;;  %983 = vmax.xlane.f32.xlu1 %v982_v16  ;;  %980 = vmax.xlane.f32.xlu0 %v979_v17  ;;  %v3309_v15 = vpop.permute.xlu0 %1473 }
 0x2e4   :  { %v2487_v19 = vpop.f32.mrb[11].mxu0  ;;  %v985_v26 = vsel %vm963_vm3, %v3243_v18, -inf }
 0x2e5   :  { %v3245_v20 = vpop.f32.mrb[8].mxu1 }
 0x2e6   :  { %v2492_v25 = vpop.f32.mrb[9].mxu1  ;;  %v988_v27 = vsel %vm963_vm3, %v3245_v20, -inf }
 0x2e7   :  { %986 = vmax.xlane.f32.xlu0 %v985_v26  ;;  %989 = vmax.xlane.f32.xlu1 %v988_v27  ;;  %v3251_v28 = vpop.f32.mrb[10].mxu1  ;;  %v3317_v26 = vpop.permute.xlu1 %1426 }
 0x2e8   :  { %v2493_v29 = vpop.f32.mrb[11].mxu1  ;;  %v991_v33 = vsel %vm963_vm3, %v3251_v28, -inf }
 0x2e9   :  { %v3253_v30 = vpop.f32.mrb[12].mxu0 }
 0x2ea   :  { %v2498_v31 = vpop.f32.mrb[13].mxu0  ;;  %v994_v32 = vsel %vm963_vm3, %v3253_v30, -inf }
 0x2eb   :  { %v3259_v34 = vpop.f32.mrb[14].mxu0  ;;  %995 = vmax.xlane.f32.xlu1 %v994_v32  ;;  %992 = vmax.xlane.f32.xlu0 %v991_v33 }
 0x2ec   :  { %v2499_v35 = vpop.f32.mrb[15].mxu0  ;;  %v997_v38 = vsel %vm963_vm3, %v3259_v34, -inf }
 0x2ed   :  { %v3261_v36 = vpop.f32.mrb[12].mxu1 }
 0x2ee   :  { %v2504_v37 = vpop.f32.mrb[13].mxu1  ;;  %v1000_v39 = vsel %vm963_vm3, %v3261_v36, -inf }
 0x2ef   :  { %998 = vmax.xlane.f32.xlu0 %v997_v38  ;;  %1001 = vmax.xlane.f32.xlu1 %v1000_v39  ;;  %v3267_v40 = vpop.f32.mrb[14].mxu1  ;;  %v3327_v37 = vpop.permute.xlu0 %1567 }
 0x2f0   :  { %v2505_v41 = vpop.f32.mrb[15].mxu1  ;;  %v1003_v46 = vsel %vm963_vm3, %v3267_v40, -inf }
 0x2f1   :  { %v3269_v42 = vpop.f32.mrb[16].mxu0  ;;  %v3331_v41 = vpop.permute.xlu1 %1520 }
 0x2f2   :  { %v2510_v44 = vpop.f32.mrb[17].mxu0  ;;  %v1006_v45 = vsel %vm963_vm3, %v3269_v42, -inf }
 0x2f3   :  { %v3277_v47 = vpop.f32.mrb[18].mxu0  ;;  %1007 = vmax.xlane.f32.xlu1 %v1006_v45  ;;  %1004 = vmax.xlane.f32.xlu0 %v1003_v46 }
 0x2f4   :  { %v2511_v48 = vpop.f32.mrb[19].mxu0  ;;  %v1009_v51 = vsel %vm963_vm3, %v3277_v47, -inf }
 0x2f5   :  { %v3279_v49 = vpop.f32.mrb[16].mxu1 }
 0x2f6   :  { %v2516_v50 = vpop.f32.mrb[17].mxu1  ;;  %v1012_v52 = vsel %vm963_vm3, %v3279_v49, -inf }
 0x2f7   :  { %1010 = vmax.xlane.f32.xlu0 %v1009_v51  ;;  %1013 = vmax.xlane.f32.xlu1 %v1012_v52  ;;  %v3285_v53 = vpop.f32.mrb[18].mxu1  ;;  %v3339_v51 = vpop.permute.xlu0 %1661 }
 0x2f8   :  { %v2517_v55 = vpop.f32.mrb[19].mxu1  ;;  %v1015_v61 = vsel %vm963_vm3, %v3285_v53, -inf }
 0x2f9   :  { %v3289_v56 = vpop.f32.mrb[20].mxu0 }
 0x2fa   :  { %v2522_v58 = vpop.f32.mrb[21].mxu0  ;;  %v1018_v59 = vsel %vm963_vm3, %v3289_v56, -inf }
 0x2fb   :  { %v3295_v62 = vpop.f32.mrb[22].mxu0  ;;  %1019 = vmax.xlane.f32.xlu1 %v1018_v59  ;;  %1016 = vmax.xlane.f32.xlu0 %v1015_v61  ;;  %v3343_v58 = vpop.permute.xlu1 %1614 }
 0x2fc   :  { %v2523_v0 = vpop.f32.mrb[23].mxu0  ;;  %v1021_v6 = vsel %vm963_vm3, %v3295_v62, -inf }
 0x2fd   :  { %v3297_v1 = vpop.f32.mrb[20].mxu1 }
 0x2fe   :  { %v2528_v4 = vpop.f32.mrb[21].mxu1  ;;  %v1024_v8 = vsel %vm963_vm3, %v3297_v1, -inf }
 0x2ff   :  { %1022 = vmax.xlane.f32.xlu0 %v1021_v6  ;;  %1025 = vmax.xlane.f32.xlu1 %v1024_v8  ;;  %v3305_v9 = vpop.f32.mrb[22].mxu1 }
 0x300   :  { %v2529_v11 = vpop.f32.mrb[23].mxu1  ;;  %v1027_v19 = vsel %vm963_vm3, %v3305_v9, -inf }
 0x301   :  { %v3307_v13 = vpop.f32.mrb[24].mxu0 }
 0x302   :  { %v2534_v16 = vpop.f32.mrb[25].mxu0  ;;  %v1030_v17 = vsel %vm963_vm3, %v3307_v13, -inf }
 0x303   :  { %v3315_v25 = vpop.f32.mrb[26].mxu0  ;;  %1031 = vmax.xlane.f32.xlu1 %v1030_v17  ;;  %1028 = vmax.xlane.f32.xlu0 %v1027_v19 }
 0x304   :  { %v2535_v27 = vpop.f32.mrb[27].mxu0  ;;  %v1033_v32 = vsel %vm963_vm3, %v3315_v25, -inf }
 0x305   :  { %v3319_v29 = vpop.f32.mrb[24].mxu1 }
 0x306   :  { %v2540_v31 = vpop.f32.mrb[25].mxu1  ;;  %v1036_v33 = vsel %vm963_vm3, %v3319_v29, -inf }
 0x307   :  { %1034 = vmax.xlane.f32.xlu0 %v1033_v32  ;;  %1037 = vmax.xlane.f32.xlu1 %v1036_v33  ;;  %v3325_v35 = vpop.f32.mrb[26].mxu1 }
 0x308   :  { %v2541_v38 = vpop.f32.mrb[27].mxu1  ;;  %v1039_v45 = vsel %vm963_vm3, %v3325_v35, -inf }
 0x309   :  { %v3329_v39 = vpop.f32.mrb[28].mxu0 }
 0x30a   :  { %v2546_v44 = vpop.f32.mrb[29].mxu0  ;;  %v1042_v38 = vsel %vm963_vm3, %v3329_v39, -inf }
 0x30b   :  { %v3335_v46 = vpop.f32.mrb[30].mxu0  ;;  %1040 = vmax.xlane.f32.xlu0 %v1039_v45 }
 0x30c   :  { %v2547_v48 = vpop.f32.mrb[31].mxu0 }
 0x30d   :  { %v3337_v50 = vpop.f32.mrb[28].mxu1 }
 0x30e   :  { %v2552_v52 = vpop.f32.mrb[29].mxu1  ;;  %v1048_v44 = vsel %vm963_vm3, %v3337_v50, -inf }
 0x30f   :  { %v3341_v55 = vpop.f32.mrb[30].mxu1 }
 0x310   :  { %v2553_v59 = vpop.f32.mrb[31].mxu1  ;;  %v1051_v45 = vsel %vm963_vm3, %v3341_v55, -inf }
 0x311   :  { %v3345_v61 = vpop.f32.mrb[32].mxu0 }
 0x312   :  { %v966_v0 = vpop.xlane.xlu0 %965  ;;  %v2558_v4 = vpop.f32.mrb[33].mxu0  ;;  %v1054_v48 = vsel %vm963_vm3, %v3345_v61, -inf }
 0x313   :  { %v1060_v6 = vsub.f32 %v3215_v60, %v966_v0  ;;  %v3348_v8 = vpop.f32.mrb[34].mxu0 }
 0x314   :  { %v969_v11 = vpop.xlane.xlu1 %968  ;;  %v2559_v16 = vpop.f32.mrb[35].mxu0  ;;  %v1057_v52 = vsel %vm963_vm3, %v3348_v8, -inf }
 0x315   :  { %v1092_v17 = vmul.f32 1.442695, %v1060_v6  ;;  %v1061_v19 = vsub.f32 %v3219_v63, %v969_v11  ;;  %v1045_v63 = vsel %vm963_vm3, %v3335_v46, -inf }
 0x317   :  { %2693 = vpow2.f32 %v1092_v17  ;;  %v1094_v27 = vmul.f32 1.442695, %v1061_v19 }
 0x319   :  { %2695 = vpow2.f32 %v1094_v27 }
 0x321   :  { %v3351_v31 = vpop.eup %2693 }
 0x322   :  { %v1156_v32 = vsel %vm963_vm3, %v3351_v31, 0.0 }
 0x323   :  { %v3355_v33 = vpop.eup %2695  ;;  %1157 = vadd.xlane.f32.xlu1 %v1156_v32 }
 0x324   :  { %v1159_v60 = vsel %vm963_vm3, %v3355_v33, 0.0 }
 0x325   :  { %1160 = vadd.xlane.f32.xlu0 %v1159_v60 }
 0x327   :  { %1043 = vmax.xlane.f32.xlu1 %v1042_v38 }
 0x329   :  { %1046 = vmax.xlane.f32.xlu0 %v1045_v63 }
 0x32b   :  { %1049 = vmax.xlane.f32.xlu1 %v1048_v44 }
 0x32d   :  { %1052 = vmax.xlane.f32.xlu0 %v1051_v45 }
 0x32f   :  { %1055 = vmax.xlane.f32.xlu1 %v1054_v48 }
 0x331   :  { %1058 = vmax.xlane.f32.xlu0 %v1057_v52 }
 0x340   :  { %1943 = vrot.lane.b32.xlu1 %v3081_v22, %s2917_s27 }
 0x347   :  { %1896 = vrot.lane.b32.xlu0 %v3075_v21, %s2917_s27 }
 0x368   :  { %v972_v59 = vpop.xlane.xlu0 %971 }
 0x369   :  { %v1062_v0 = vsub.f32 %v3223_v2, %v972_v59 }
 0x36b   :  { %v1096_v4 = vmul.f32 1.442695, %v1062_v0 }
 0x36c   :  { %v978_v6 = vpop.xlane.xlu1 %977  ;;  %v975_v11 = vpop.xlane.xlu0 %974 }
 0x36d   :  { %2697 = vpow2.f32 %v1096_v4  ;;  %v1064_v16 = vsub.f32 %v3229_v7, %v978_v6  ;;  %v1063_v17 = vsub.f32 %v3227_v5, %v975_v11 }
 0x36f   :  { %v1100_v19 = vmul.f32 1.442695, %v1064_v16  ;;  %v1098_v27 = vmul.f32 1.442695, %v1063_v17 }
 0x370   :  { %v984_v32 = vpop.xlane.xlu1 %983  ;;  %v981_v60 = vpop.xlane.xlu0 %980 }
 0x371   :  { %2699 = vpow2.f32 %v1100_v19  ;;  %v1066_v22 = vsub.f32 %v3237_v14, %v984_v32  ;;  %v1065_v21 = vsub.f32 %v3235_v12, %v981_v60 }
 0x372   :  { %2701 = vpow2.f32 %v1098_v27 }
 0x373   :  { %v1104_v38 = vmul.f32 1.442695, %v1066_v22  ;;  %v1102_v2 = vmul.f32 1.442695, %v1065_v21 }
 0x374   :  { %v990_v63 = vpop.xlane.xlu1 %989  ;;  %v987_v44 = vpop.xlane.xlu0 %986 }
 0x375   :  { %2703 = vpow2.f32 %v1104_v38  ;;  %v1068_v45 = vsub.f32 %v3245_v20, %v990_v63  ;;  %v1067_v7 = vsub.f32 %v3243_v18, %v987_v44 }
 0x376   :  { %2705 = vpow2.f32 %v1102_v2 }
 0x377   :  { %v3382_v5 = vpop.eup %2697  ;;  %v1108_v48 = vmul.f32 1.442695, %v1068_v45  ;;  %v1106_v52 = vmul.f32 1.442695, %v1067_v7 }
 0x378   :  { %v996_v59 = vpop.xlane.xlu1 %995  ;;  %v993_v0 = vpop.xlane.xlu0 %992  ;;  %v1162_v12 = vsel %vm963_vm3, %v3382_v5, 0.0 }
 0x379   :  { %2707 = vpow2.f32 %v1108_v48  ;;  %v1070_v14 = vsub.f32 %v3253_v30, %v996_v59  ;;  %v1069_v4 = vsub.f32 %v3251_v28, %v993_v0  ;;  %1163 = vadd.xlane.f32.xlu1 %v1162_v12 }
 0x37a   :  { %2709 = vpow2.f32 %v1106_v52 }
 0x37b   :  { %v3388_v20 = vpop.eup %2699  ;;  %v1112_v18 = vmul.f32 1.442695, %v1070_v14  ;;  %v1110_v6 = vmul.f32 1.442695, %v1069_v4 }
 0x37c   :  { %v3390_v11 = vpop.eup %2701  ;;  %v1002_v16 = vpop.xlane.xlu1 %1001  ;;  %v1168_v19 = vsel %vm963_vm3, %v3388_v20, 0.0 }
 0x37d   :  { %v999_v17 = vpop.xlane.xlu0 %998  ;;  %2711 = vpow2.f32 %v1112_v18  ;;  %v1072_v27 = vsub.f32 %v3261_v36, %v1002_v16  ;;  %1169 = vadd.xlane.f32.xlu1 %v1168_v19  ;;  %v1165_v28 = vsel %vm963_vm3, %v3390_v11, 0.0 }
 0x37e   :  { %v1071_v30 = vsub.f32 %v3259_v34, %v999_v17  ;;  %2713 = vpow2.f32 %v1110_v6  ;;  %1166 = vadd.xlane.f32.xlu0 %v1165_v28 }
 0x37f   :  { %v3398_v32 = vpop.eup %2703  ;;  %v1116_v60 = vmul.f32 1.442695, %v1072_v27 }
 0x380   :  { %v1114_v22 = vmul.f32 1.442695, %v1071_v30  ;;  %v3400_v21 = vpop.eup %2705  ;;  %v1008_v38 = vpop.xlane.xlu1 %1007  ;;  %v1174_v63 = vsel %vm963_vm3, %v3398_v32, 0.0 }
 0x381   :  { %v1005_v2 = vpop.xlane.xlu0 %1004  ;;  %2715 = vpow2.f32 %v1116_v60  ;;  %v1074_v34 = vsub.f32 %v3269_v42, %v1008_v38  ;;  %1175 = vadd.xlane.f32.xlu1 %v1174_v63  ;;  %v1171_v44 = vsel %vm963_vm3, %v3400_v21, 0.0 }
 0x382   :  { %v1073_v36 = vsub.f32 %v3267_v40, %v1005_v2  ;;  %2717 = vpow2.f32 %v1114_v22  ;;  %1172 = vadd.xlane.f32.xlu0 %v1171_v44 }
 0x383   :  { %v3408_v45 = vpop.eup %2707  ;;  %v1120_v7 = vmul.f32 1.442695, %v1074_v34 }
 0x384   :  { %v1118_v48 = vmul.f32 1.442695, %v1073_v36  ;;  %v3410_v52 = vpop.eup %2709  ;;  %v1014_v59 = vpop.xlane.xlu1 %1013  ;;  %v1180_v12 = vsel %vm963_vm3, %v3408_v45, 0.0 }
 0x385   :  { %v1011_v0 = vpop.xlane.xlu0 %1010  ;;  %2719 = vpow2.f32 %v1120_v7  ;;  %v1076_v40 = vsub.f32 %v3279_v49, %v1014_v59  ;;  %1181 = vadd.xlane.f32.xlu1 %v1180_v12  ;;  %v1177_v14 = vsel %vm963_vm3, %v3410_v52, 0.0 }
 0x386   :  { %v1075_v42 = vsub.f32 %v3277_v47, %v1011_v0  ;;  %2721 = vpow2.f32 %v1118_v48  ;;  %1178 = vadd.xlane.f32.xlu0 %v1177_v14 }
 0x387   :  { %v3418_v4 = vpop.eup %2711  ;;  %v1124_v18 = vmul.f32 1.442695, %v1076_v40 }
 0x388   :  { %v1122_v6 = vmul.f32 1.442695, %v1075_v42  ;;  %v3420_v16 = vpop.eup %2713  ;;  %v1020_v17 = vpop.xlane.xlu1 %1019  ;;  %v1186_v27 = vsel %vm963_vm3, %v3418_v4, 0.0 }
 0x389   :  { %v1017_v19 = vpop.xlane.xlu0 %1016  ;;  %2723 = vpow2.f32 %v1124_v18  ;;  %v1078_v47 = vsub.f32 %v3289_v56, %v1020_v17  ;;  %1187 = vadd.xlane.f32.xlu1 %v1186_v27  ;;  %v1183_v30 = vsel %vm963_vm3, %v3420_v16, 0.0 }
 0x38a   :  { %v1077_v49 = vsub.f32 %v3285_v53, %v1017_v19  ;;  %2725 = vpow2.f32 %v1122_v6  ;;  %1184 = vadd.xlane.f32.xlu0 %v1183_v30 }
 0x38b   :  { %v3428_v28 = vpop.eup %2715  ;;  %v1128_v60 = vmul.f32 1.442695, %v1078_v47 }
 0x38c   :  { %v1126_v22 = vmul.f32 1.442695, %v1077_v49  ;;  %v3430_v38 = vpop.eup %2717  ;;  %v1026_v2 = vpop.xlane.xlu1 %1025  ;;  %v1192_v34 = vsel %vm963_vm3, %v3428_v28, 0.0 }
 0x38d   :  { %v1023_v63 = vpop.xlane.xlu0 %1022  ;;  %2727 = vpow2.f32 %v1128_v60  ;;  %v1080_v53 = vsub.f32 %v3297_v1, %v1026_v2  ;;  %1193 = vadd.xlane.f32.xlu1 %v1192_v34  ;;  %v1189_v36 = vsel %vm963_vm3, %v3430_v38, 0.0 }
 0x38e   :  { %v1079_v56 = vsub.f32 %v3295_v62, %v1023_v63  ;;  %2729 = vpow2.f32 %v1126_v22  ;;  %1190 = vadd.xlane.f32.xlu0 %v1189_v36 }
 0x38f   :  { %v3438_v44 = vpop.eup %2719  ;;  %v1132_v7 = vmul.f32 1.442695, %v1080_v53 }
 0x390   :  { %v1130_v48 = vmul.f32 1.442695, %v1079_v56  ;;  %v3440_v59 = vpop.eup %2721  ;;  %v1032_v0 = vpop.xlane.xlu1 %1031  ;;  %v1198_v40 = vsel %vm963_vm3, %v3438_v44, 0.0 }
 0x391   :  { %v1029_v12 = vpop.xlane.xlu0 %1028  ;;  %2731 = vpow2.f32 %v1132_v7  ;;  %v1082_v62 = vsub.f32 %v3307_v13, %v1032_v0  ;;  %1199 = vadd.xlane.f32.xlu1 %v1198_v40  ;;  %v1195_v42 = vsel %vm963_vm3, %v3440_v59, 0.0 }
 0x392   :  { %v1081_v1 = vsub.f32 %v3305_v9, %v1029_v12  ;;  %2733 = vpow2.f32 %v1130_v48  ;;  %1196 = vadd.xlane.f32.xlu0 %v1195_v42 }
 0x393   :  { %v3448_v14 = vpop.eup %2723  ;;  %v1136_v18 = vmul.f32 1.442695, %v1082_v62 }
 0x394   :  { %v1134_v6 = vmul.f32 1.442695, %v1081_v1  ;;  %v3450_v17 = vpop.eup %2725  ;;  %v1038_v19 = vpop.xlane.xlu1 %1037  ;;  %v1204_v47 = vsel %vm963_vm3, %v3448_v14, 0.0 }
 0x395   :  { %v1035_v27 = vpop.xlane.xlu0 %1034  ;;  %2735 = vpow2.f32 %v1136_v18  ;;  %v1084_v9 = vsub.f32 %v3319_v29, %v1038_v19  ;;  %1205 = vadd.xlane.f32.xlu1 %v1204_v47  ;;  %v1201_v49 = vsel %vm963_vm3, %v3450_v17, 0.0 }
 0x396   :  { %v1083_v13 = vsub.f32 %v3315_v25, %v1035_v27  ;;  %2737 = vpow2.f32 %v1134_v6  ;;  %1202 = vadd.xlane.f32.xlu0 %v1201_v49 }
 0x397   :  { %v3458_v30 = vpop.eup %2727  ;;  %v1140_v60 = vmul.f32 1.442695, %v1084_v9 }
 0x398   :  { %v1138_v22 = vmul.f32 1.442695, %v1083_v13  ;;  %v3460_v2 = vpop.eup %2729  ;;  %v1210_v34 = vsel %vm963_vm3, %v3458_v30, 0.0 }
 0x399   :  { %v1041_v63 = vpop.xlane.xlu0 %1040  ;;  %2739 = vpow2.f32 %v1140_v60  ;;  %1211 = vadd.xlane.f32.xlu1 %v1210_v34  ;;  %v1207_v25 = vsel %vm963_vm3, %v3460_v2, 0.0 }
 0x39a   :  { %v1085_v29 = vsub.f32 %v3325_v35, %v1041_v63  ;;  %2741 = vpow2.f32 %v1138_v22  ;;  %1208 = vadd.xlane.f32.xlu0 %v1207_v25 }
 0x39b   :  { %v3467_v53 = vpop.eup %2731 }
 0x39c   :  { %v1142_v56 = vmul.f32 1.442695, %v1085_v29  ;;  %v3469_v36 = vpop.eup %2733  ;;  %v1216_v7 = vsel %vm963_vm3, %v3467_v53, 0.0 }
 0x39d   :  { %1217 = vadd.xlane.f32.xlu1 %v1216_v7  ;;  %v1213_v48 = vsel %vm963_vm3, %v3469_v36, 0.0 }
 0x39e   :  { %2743 = vpow2.f32 %v1142_v56  ;;  %1214 = vadd.xlane.f32.xlu0 %v1213_v48 }
 0x39f   :  { %v3475_v35 = vpop.eup %2735 }
 0x3a0   :  { %v3477_v0 = vpop.eup %2737  ;;  %v1222_v12 = vsel %vm963_vm3, %v3475_v35, 0.0 }
 0x3a1   :  { %1223 = vadd.xlane.f32.xlu1 %v1222_v12  ;;  %v1219_v40 = vsel %vm963_vm3, %v3477_v0, 0.0 }
 0x3a2   :  { %1220 = vadd.xlane.f32.xlu0 %v1219_v40 }
 0x3a3   :  { %v3483_v62 = vpop.eup %2739 }
 0x3a4   :  { %v3485_v1 = vpop.eup %2741  ;;  %v1228_v42 = vsel %vm963_vm3, %v3483_v62, 0.0 }
 0x3a5   :  { %1229 = vadd.xlane.f32.xlu1 %v1228_v42  ;;  %v1225_v18 = vsel %vm963_vm3, %v3485_v1, 0.0 }
 0x3a6   :  { %1226 = vadd.xlane.f32.xlu0 %v1225_v18 }
 0x3a8   :  { %v3491_v6 = vpop.eup %2743 }
 0x3a9   :  { %v1231_v19 = vsel %vm963_vm3, %v3491_v6, 0.0 }
 0x3aa   :  { %1232 = vadd.xlane.f32.xlu0 %v1231_v19 }
 0x3b0   :  { %v1158_v27 = vpop.xlane.xlu1 %1157 }
 0x3b1   :  { %2745 = vrcp.f32 %v1158_v27 }
 0x3b2   :  { %v1161_v47 = vpop.xlane.xlu0 %1160 }
 0x3b3   :  { %2747 = vrcp.f32 %v1161_v47 }
 0x3b4   :  { %v1044_v9 = vpop.xlane.xlu1 %1043 }
 0x3b5   :  { %v1086_v13 = vsub.f32 %v3329_v39, %v1044_v9 }
 0x3b6   :  { %v1047_v49 = vpop.xlane.xlu0 %1046 }
 0x3b7   :  { %v1144_v60 = vmul.f32 1.442695, %v1086_v13  ;;  %v1087_v22 = vsub.f32 %v3335_v46, %v1047_v49 }
 0x3b8   :  { %v1050_v63 = vpop.xlane.xlu1 %1049 }
 0x3b9   :  { %2749 = vpow2.f32 %v1144_v60  ;;  %v1146_v34 = vmul.f32 1.442695, %v1087_v22  ;;  %v1088_v29 = vsub.f32 %v3337_v50, %v1050_v63 }
 0x3ba   :  { %v1053_v25 = vpop.xlane.xlu0 %1052 }
 0x3bb   :  { %v2746_v56 = vpop.eup %2745  ;;  %2751 = vpow2.f32 %v1146_v34  ;;  %v1148_v7 = vmul.f32 1.442695, %v1088_v29  ;;  %v1089_v48 = vsub.f32 %v3341_v55, %v1053_v25 }
 0x3bc   :  { %v1056_v12 = vpop.xlane.xlu1 %1055  ;;  %v1284_v18 = vmul.f32 %v2746_v56, %v3351_v31 }
 0x3bd   :  { %v2748_v40 = vpop.eup %2747  ;;  %2753 = vpow2.f32 %v1148_v7  ;;  %v1150_v42 = vmul.f32 1.442695, %v1089_v48  ;;  %v1090_v39 = vsub.f32 %v3345_v61, %v1056_v12 }
 0x3be   :  { %v1285_v46 = vmul.f32 %v2748_v40, %v3355_v33  ;;  %v1059_v19 = vpop.xlane.xlu0 %1058 }
 0x3bf   :  { %2755 = vpow2.f32 %v1150_v42  ;;  %v1152_v27 = vmul.f32 1.442695, %v1090_v39  ;;  %v1091_v50 = vsub.f32 %v3348_v8, %v1059_v19 }
 0x3c0   :  { %v1316_v47 = vpack.c.bf16 %v1285_v46, %v1284_v18  ;;  %v3536_v29 = vpop.permute.xlu1 %1943 }
 0x3c1   :  { %2757 = vpow2.f32 %v1152_v27  ;;  %v1154_v9 = vmul.f32 1.442695, %v1091_v50 }
 0x3c2   :  { %2563 = vmatmul.mubr.msk.bf16.vlgmr.msra.gmra.mrb[32].mxu1 %vm963_vm3, %v1316_v47  ;;  %v3538_v56 = vpop.permute.xlu0 %1896 }
 0x3c3   :  { %v3504_v55 = vpop.eup %2749  ;;  %2759 = vpow2.f32 %v1154_v9  ;;  %2573 = vmatpush3.bf16.msra.mxu1 %v3317_v26  ;;  %2574 = vmatprep.mubr.msk.bf16.mxu1 %vm2928_vm1, %v2927_v10 }
 0x3c4   :  { %v1234_v61 = vsel %vm963_vm3, %v3504_v55, 0.0  ;;  %2584 = vmatprep.subr.bf16.mxu1 %v2927_v10 }
 0x3c5   :  { %v3512_v31 = vpop.eup %2751  ;;  %1235 = vadd.xlane.f32.xlu1 %v1234_v61 }
 0x3c6   :  { %v1237_v8 = vsel %vm963_vm3, %v3512_v31, 0.0 }
 0x3c7   :  { %v3516_v33 = vpop.eup %2753  ;;  %1238 = vadd.xlane.f32.xlu0 %v1237_v8 }
 0x3c8   :  { %v1240_v26 = vsel %vm963_vm3, %v3516_v33, 0.0 }
 0x3c9   :  { %v3520_v13 = vpop.eup %2755  ;;  %1241 = vadd.xlane.f32.xlu1 %v1240_v26 }
 0x3ca   :  { %v1243_v49 = vsel %vm963_vm3, %v3520_v13, 0.0 }
 0x3cb   :  { %v3524_v60 = vpop.eup %2757  ;;  %1244 = vadd.xlane.f32.xlu0 %v1243_v49 }
 0x3cc   :  { %v1246_v22 = vsel %vm963_vm3, %v3524_v60, 0.0 }
 0x3cd   :  { %v3528_v63 = vpop.eup %2759  ;;  %1247 = vadd.xlane.f32.xlu1 %v1246_v22 }
 0x3ce   :  { %v1249_v34 = vsel %vm963_vm3, %v3528_v63, 0.0 }
 0x3cf   :  { %1250 = vadd.xlane.f32.xlu0 %v1249_v34 }
 0x3de   :  { %2037 = vrot.lane.b32.xlu1 %v3089_v24, %s2917_s27 }
 0x3e5   :  { %1990 = vrot.lane.b32.xlu0 %v3083_v23, %s2917_s27  ;;  %s2930_s27 = smov 8  }
 0x406   :  { %v1164_v25 = vpop.xlane.xlu1 %1163 }
 0x407   :  { %2761 = vrcp.f32 %v1164_v25 }
 0x40a   :  { %v1170_v7 = vpop.xlane.xlu1 %1169 }
 0x40b   :  { %v1167_v48 = vpop.xlane.xlu0 %1166 }
 0x40c   :  { %2763 = vrcp.f32 %v1167_v48 }
 0x40d   :  { %2765 = vrcp.f32 %v1170_v7 }
 0x40e   :  { %v1176_v12 = vpop.xlane.xlu1 %1175 }
 0x40f   :  { %v1173_v40 = vpop.xlane.xlu0 %1172 }
 0x410   :  { %2767 = vrcp.f32 %v1173_v40 }
 0x411   :  { %2769 = vrcp.f32 %v1176_v12  ;;  %v2762_v24 = vpop.eup %2761 }
 0x412   :  { %v1182_v42 = vpop.xlane.xlu1 %1181  ;;  %v1286_v46 = vmul.f32 %v2762_v24, %v3382_v5 }
 0x413   :  { %v1179_v39 = vpop.xlane.xlu0 %1178 }
 0x414   :  { %2771 = vrcp.f32 %v1179_v39 }
 0x415   :  { %2773 = vrcp.f32 %v1182_v42 }
 0x416   :  { %v2764_v18 = vpop.eup %2763  ;;  %v1188_v23 = vpop.xlane.xlu1 %1187 }
 0x417   :  { %v1287_v19 = vmul.f32 %v2764_v18, %v3390_v11  ;;  %v1185_v27 = vpop.xlane.xlu0 %1184  ;;  %v2766_v50 = vpop.eup %2765 }
 0x418   :  { %2775 = vrcp.f32 %v1185_v27  ;;  %v1288_v8 = vmul.f32 %v2766_v50, %v3388_v20 }
 0x419   :  { %v1317_v47 = vpack.c.bf16 %v1287_v19, %v1286_v46  ;;  %2777 = vrcp.f32 %v1188_v23 }
 0x41a   :  { %v2768_v9 = vpop.eup %2767  ;;  %v1194_v61 = vpop.xlane.xlu1 %1193 }
 0x41b   :  { %v1289_v26 = vmul.f32 %v2768_v9, %v3400_v21  ;;  %2569 = vmatmul.mubr.msk.bf16.vlgmr.msra.gmra.mrb[36].mxu0 %vm963_vm3, %v1317_v47  ;;  %v1191_v49 = vpop.xlane.xlu0 %1190  ;;  %v2770_v22 = vpop.eup %2769 }
 0x41c   :  { %2579 = vmatpush3.bf16.msra.mxu0 %v3309_v15  ;;  %2779 = vrcp.f32 %v1191_v49  ;;  %2580 = vmatprep.mubr.msk.bf16.mxu0 %vm2928_vm1, %v2927_v10  ;;  %v1290_v20 = vmul.f32 %v2770_v22, %v3398_v32 }
 0x41d   :  { %v1318_v5 = vpack.c.bf16 %v1289_v26, %v1288_v8  ;;  %2590 = vmatprep.subr.bf16.mxu0 %v2927_v10  ;;  %2781 = vrcp.f32 %v1194_v61 }
 0x41e   :  { %v2772_v11 = vpop.eup %2771  ;;  %v1200_v34 = vpop.xlane.xlu1 %1199 }
 0x41f   :  { %v1291_v21 = vmul.f32 %v2772_v11, %v3410_v52  ;;  %2575 = vmatmul.mubr.msk.bf16.vlgmr.msra.gmra.mrb[36].mxu1 %vm963_vm3, %v1318_v5  ;;  %v1197_v25 = vpop.xlane.xlu0 %1196  ;;  %v2774_v7 = vpop.eup %2773 }
 0x420   :  { %2585 = vmatpush3.bf16.msra.mxu1 %v3331_v41  ;;  %2783 = vrcp.f32 %v1197_v25  ;;  %2586 = vmatprep.mubr.msk.bf16.mxu1 %vm2928_vm1, %v2927_v10  ;;  %v1292_v32 = vmul.f32 %v2774_v7, %v3408_v45 }
 0x421   :  { %v1319_v15 = vpack.c.bf16 %v1291_v21, %v1290_v20  ;;  %2596 = vmatprep.subr.bf16.mxu1 %v2927_v10  ;;  %2785 = vrcp.f32 %v1200_v34 }
 0x422   :  { %v2776_v48 = vpop.eup %2775  ;;  %v1206_v12 = vpop.xlane.xlu1 %1205 }
 0x423   :  { %v1293_v52 = vmul.f32 %v2776_v48, %v3420_v16  ;;  %2581 = vmatmul.mubr.msk.bf16.vlgmr.msra.gmra.mrb[40].mxu0 %vm963_vm3, %v1319_v15  ;;  %v1203_v40 = vpop.xlane.xlu0 %1202  ;;  %v2778_v42 = vpop.eup %2777 }
 0x424   :  { %2591 = vmatpush3.bf16.msra.mxu0 %v3327_v37  ;;  %2787 = vrcp.f32 %v1203_v40  ;;  %2592 = vmatprep.mubr.msk.bf16.mxu0 %vm2928_vm1, %v2927_v10  ;;  %v1294_v45 = vmul.f32 %v2778_v42, %v3418_v4 }
 0x425   :  { %v1320_v41 = vpack.c.bf16 %v1293_v52, %v1292_v32  ;;  %2602 = vmatprep.subr.bf16.mxu0 %v2927_v10  ;;  %2789 = vrcp.f32 %v1206_v12 }
 0x426   :  { %v2780_v39 = vpop.eup %2779  ;;  %v1212_v24 = vpop.xlane.xlu1 %1211 }
 0x427   :  { %v1295_v16 = vmul.f32 %v2780_v39, %v3430_v38  ;;  %2587 = vmatmul.mubr.msk.bf16.vlgmr.msra.gmra.mrb[40].mxu1 %vm963_vm3, %v1320_v41  ;;  %v1209_v18 = vpop.xlane.xlu0 %1208  ;;  %v2782_v23 = vpop.eup %2781 }
 0x428   :  { %2597 = vmatpush3.bf16.msra.mxu1 %v3343_v58  ;;  %2791 = vrcp.f32 %v1209_v18  ;;  %2598 = vmatprep.mubr.msk.bf16.mxu1 %vm2928_vm1, %v2927_v10  ;;  %v1296_v4 = vmul.f32 %v2782_v23, %v3428_v28 }
 0x429   :  { %v1321_v37 = vpack.c.bf16 %v1295_v16, %v1294_v45  ;;  %2608 = vmatprep.subr.bf16.mxu1 %v2927_v10  ;;  %2793 = vrcp.f32 %v1212_v24 }
 0x42a   :  { %v2784_v46 = vpop.eup %2783  ;;  %v1218_v19 = vpop.xlane.xlu1 %1217 }
 0x42b   :  { %v1297_v38 = vmul.f32 %v2784_v46, %v3440_v59  ;;  %2593 = vmatmul.mubr.msk.bf16.vlgmr.msra.gmra.mrb[44].mxu0 %vm963_vm3, %v1321_v37  ;;  %v1215_v27 = vpop.xlane.xlu0 %1214  ;;  %v2786_v50 = vpop.eup %2785 }
 0x42c   :  { %2603 = vmatpush3.bf16.msra.mxu0 %v3339_v51  ;;  %2795 = vrcp.f32 %v1215_v27  ;;  %2604 = vmatprep.mubr.msk.bf16.mxu0 %vm2928_vm1, %v2927_v10  ;;  %v1298_v28 = vmul.f32 %v2786_v50, %v3438_v44 }
 0x42d   :  { %v1322_v58 = vpack.c.bf16 %v1297_v38, %v1296_v4  ;;  %2614 = vmatprep.subr.bf16.mxu0 %v2927_v10  ;;  %2797 = vrcp.f32 %v1218_v19 }
 0x42e   :  { %v2788_v47 = vpop.eup %2787  ;;  %v1224_v9 = vpop.xlane.xlu1 %1223 }
 0x42f   :  { %v1299_v59 = vmul.f32 %v2788_v47, %v3450_v17  ;;  %2599 = vmatmul.mubr.msk.bf16.vlgmr.msra.gmra.mrb[44].mxu1 %vm963_vm3, %v1322_v58  ;;  %v1221_v61 = vpop.xlane.xlu0 %1220  ;;  %v2790_v8 = vpop.eup %2789 }
 0x430   :  { %2609 = vmatpush3.bf16.msra.mxu1 %v3271_v43  ;;  %2799 = vrcp.f32 %v1221_v61  ;;  %2610 = vmatprep.mubr.msk.bf16.mxu1 %vm2928_vm1, %v2927_v10  ;;  %v1300_v49 = vmul.f32 %v2790_v8, %v3448_v14 }
 0x431   :  { %v1323_v51 = vpack.c.bf16 %v1299_v59, %v1298_v28  ;;  %2620 = vmatprep.subr.bf16.mxu1 %v2927_v10  ;;  %2801 = vrcp.f32 %v1224_v9 }
 0x432   :  { %v2792_v26 = vpop.eup %2791  ;;  %v1230_v17 = vpop.xlane.xlu1 %1229 }
 0x433   :  { %v1301_v44 = vmul.f32 %v2792_v26, %v3460_v2  ;;  %2605 = vmatmul.mubr.msk.bf16.vlgmr.msra.gmra.mrb[48].mxu0 %vm963_vm3, %v1323_v51  ;;  %v1227_v22 = vpop.xlane.xlu0 %1226  ;;  %v2794_v5 = vpop.eup %2793 }
 0x434   :  { %2615 = vmatpush3.bf16.msra.mxu0 %v3202_v57  ;;  %2803 = vrcp.f32 %v1227_v22  ;;  %2616 = vmatprep.mubr.msk.bf16.mxu0 %vm2928_vm1, %v2927_v10  ;;  %v1302_v14 = vmul.f32 %v2794_v5, %v3458_v30 }
 0x435   :  { %v1324_v43 = vpack.c.bf16 %v1301_v44, %v1300_v49  ;;  %2626 = vmatprep.subr.bf16.mxu0 %v2927_v10  ;;  %2805 = vrcp.f32 %v1230_v17 }
 0x436   :  { %v2796_v11 = vpop.eup %2795 }
 0x437   :  { %v1303_v2 = vmul.f32 %v2796_v11, %v3469_v36  ;;  %2611 = vmatmul.mubr.msk.bf16.vlgmr.msra.gmra.mrb[48].mxu1 %vm963_vm3, %v1324_v43  ;;  %v1233_v34 = vpop.xlane.xlu0 %1232  ;;  %v2798_v20 = vpop.eup %2797 }
 0x438   :  { %2621 = vmatpush3.bf16.msra.mxu1 %v3287_v54  ;;  %2807 = vrcp.f32 %v1233_v34  ;;  %2622 = vmatprep.mubr.msk.bf16.mxu1 %vm2928_vm1, %v2927_v10  ;;  %v1304_v25 = vmul.f32 %v2798_v20, %v3467_v53 }
 0x439   :  { %v1325_v57 = vpack.c.bf16 %v1303_v2, %v1302_v14  ;;  %2632 = vmatprep.subr.bf16.mxu1 %v2927_v10 }
 0x43a   :  { %v2800_v21 = vpop.eup %2799 }
 0x43b   :  { %v1305_v30 = vmul.f32 %v2800_v21, %v3477_v0  ;;  %2617 = vmatmul.mubr.msk.bf16.vlgmr.msra.gmra.mrb[52].mxu0 %vm963_vm3, %v1325_v57  ;;  %v2802_v36 = vpop.eup %2801 }
 0x43c   :  { %2627 = vmatpush3.bf16.msra.mxu0 %v3299_v3  ;;  %2628 = vmatprep.mubr.msk.bf16.mxu0 %vm2928_vm1, %v2927_v10  ;;  %v1306_v15 = vmul.f32 %v2802_v36, %v3475_v35 }
 0x43d   :  { %v1326_v54 = vpack.c.bf16 %v1305_v30, %v1304_v25  ;;  %2638 = vmatprep.subr.bf16.mxu0 %v2927_v10 }
 0x43e   :  { %v2804_v7 = vpop.eup %2803 }
 0x43f   :  { %v1307_v48 = vmul.f32 %v2804_v7, %v3485_v1  ;;  %2623 = vmatmul.mubr.msk.bf16.vlgmr.msra.gmra.mrb[52].mxu1 %vm963_vm3, %v1326_v54  ;;  %v2806_v53 = vpop.eup %2805 }
 0x440   :  { %2633 = vmatpush3.bf16.msra.mxu1 %v3538_v56  ;;  %2634 = vmatprep.mubr.msk.bf16.mxu1 %vm2928_vm1, %v2927_v10  ;;  %v1308_v12 = vmul.f32 %v2806_v53, %v3483_v62 }
 0x441   :  { %v1327_v3 = vpack.c.bf16 %v1307_v48, %v1306_v15  ;;  %2644 = vmatprep.subr.bf16.mxu1 %v2927_v10 }
 0x442   :  { %v2808_v0 = vpop.eup %2807 }
 0x443   :  { %v1309_v32 = vmul.f32 %v2808_v0, %v3491_v6  ;;  %2629 = vmatmul.mubr.msk.bf16.vlgmr.msra.gmra.mrb[56].mxu0 %vm963_vm3, %v1327_v3 }
 0x444   :  { %2639 = vmatpush3.bf16.msra.mxu0 %v3536_v29  ;;  %2640 = vmatprep.mubr.msk.bf16.mxu0 %vm2928_vm1, %v2927_v10 }
 0x445   :  { %v1328_v35 = vpack.c.bf16 %v1309_v32, %v1308_v12  ;;  %2650 = vmatprep.subr.bf16.mxu0 %v2927_v10 }
 0x447   :  { %2635 = vmatmul.mubr.msk.bf16.vlgmr.msra.gmra.mrb[56].mxu1 %vm963_vm3, %v1328_v35 }
 0x448   :  { %2646 = vmatprep.mubr.msk.bf16.mxu1 %vm2928_vm1, %v2927_v10 }
 0x452   :  { %v1236_v1 = vpop.xlane.xlu1 %1235 }
 0x453   :  { %2809 = vrcp.f32 %v1236_v1 }
 0x454   :  { %v1239_v62 = vpop.xlane.xlu0 %1238 }
 0x455   :  { %2811 = vrcp.f32 %v1239_v62 }
 0x456   :  { %v1242_v6 = vpop.xlane.xlu1 %1241 }
 0x457   :  { %2813 = vrcp.f32 %v1242_v6 }
 0x458   :  { %v1245_v56 = vpop.xlane.xlu0 %1244 }
 0x459   :  { %2815 = vrcp.f32 %v1245_v56 }
 0x45a   :  { %v1248_v29 = vpop.xlane.xlu1 %1247 }
 0x45b   :  { %2817 = vrcp.f32 %v1248_v29 }
 0x45c   :  { %v1251_v52 = vpop.xlane.xlu0 %1250 }
 0x45d   :  { %v2810_v40 = vpop.eup %2809  ;;  %2819 = vrcp.f32 %v1251_v52 }
 0x45e   :  { %v1310_v41 = vmul.f32 %v2810_v40, %v3504_v55  ;;  %v2038_v46 = vpop.permute.xlu1 %2037 }
 0x45f   :  { %v2812_v42 = vpop.eup %2811 }
 0x460   :  { %v1311_v39 = vmul.f32 %v2812_v42, %v3512_v31  ;;  %v1991_v24 = vpop.permute.xlu0 %1990 }
 0x461   :  { %v2814_v45 = vpop.eup %2813  ;;  %2645 = vmatpush3.bf16.msra.mxu1 %v1991_v24 }
 0x462   :  { %v1329_v16 = vpack.c.bf16 %v1311_v39, %v1310_v41  ;;  %v1312_v23 = vmul.f32 %v2814_v45, %v3516_v33  ;;  %v2691_v45 = vld [vmem:[#allocation8] sm:$0xff]  }
 0x463   :  { %v2816_v18 = vpop.eup %2815  ;;  %2656 = vmatprep.subr.bf16.mxu1 %v2691_v45 }
 0x464   :  { %v1313_v37 = vmul.f32 %v2816_v18, %v3520_v13  ;;  %2641 = vmatmul.mubr.msk.bf16.vlgmr.msra.gmra.mrb[60].mxu0 %vm963_vm3, %v1329_v16  ;;  %v2692_v16 = vld [vmem:[#allocation8 + $0x8] sm:$0xff]  }
 0x465   :  { %v2818_v19 = vpop.eup %2817  ;;  %2651 = vmatpush3.bf16.msra.mxu0 %v2038_v46  ;;  %2652 = vmatprep.mubr.msk.bf16.mxu0 %vm2928_vm1, %v2927_v10 }
 0x466   :  { %v1330_v55 = vpack.c.bf16 %v1313_v37, %v1312_v23  ;;  %v1314_v31 = vmul.f32 %v2818_v19, %v3524_v60 }
 0x467   :  { %v2820_v4 = vpop.eup %2819 }
 0x468   :  { %v1315_v38 = vmul.f32 %v2820_v4, %v3528_v63  ;;  %2647 = vmatmul.mubr.msk.bf16.vlgmr.msra.gmra.mrb[60].mxu1 %vm963_vm3, %v1330_v55 }
 0x469   :  { %2657 = vmatpush3.bf16.msra.mxu1 %v2691_v45 }
 0x46a   :  { %v1331_v27 = vpack.c.bf16 %v1315_v38, %v1314_v31  ;;  %2658 = vmatprep.subr.bf16.mxu1 %v2692_v16 }
 0x46c   :  { %2653 = vmatmul.mubr.msk.bf16.vlgmr.msra.gmra.mrb[64].mxu0 %vm963_vm3, %v1331_v27 }
 0x46d   :  { %2659 = vmatpush3.bf16.msra.mxu1 %v2692_v16 }
 0x495   :  { %v1372_v33 = vpop.f32.mrb[32].mxu1 }
 0x496   :  { %2084 = vst.msk [vmem:[#allocation2] sm:$0xff] %vm180_vm2, %v1372_v33  ;;  %v2564_v13 = vpop.f32.mrb[33].mxu1 }
 0x497   :  { %v1375_v50 = vpop.f32.mrb[34].mxu1 }
 0x498   :  { %2085 = vst.msk [vmem:[#allocation2 + $0x8] sm:$0xff] %vm180_vm2, %v1375_v50  ;;  %v2565_v58 = vpop.f32.mrb[35].mxu1 }
 0x4ee   :  { %v1419_v10 = vpop.f32.mrb[36].mxu0 }
 0x4ef   :  { %2088 = vrot.lane.b32.xlu0 %v1419_v10, %s2918_s28  ;;  %v2570_v47 = vpop.f32.mrb[37].mxu0 }
 0x4f0   :  { %v1422_v60 = vpop.f32.mrb[38].mxu0 }
 0x4f1   :  { %2090 = vrot.lane.b32.xlu1 %v1422_v60, %s2918_s28  ;;  %v2571_v63 = vpop.f32.mrb[39].mxu0 }
 0x4f2   :  { %v1466_v9 = vpop.f32.mrb[36].mxu1 }
 0x4f3   :  { %2099 = vrot.lane.b32.xlu0 %v1466_v9, %s2930_s27  ;;  %v2576_v28 = vpop.f32.mrb[37].mxu1 }
 0x4f4   :  { %v1469_v59 = vpop.f32.mrb[38].mxu1 }
 0x4f5   :  { %2101 = vrot.lane.b32.xlu1 %v1469_v59, %s2930_s27  ;;  %v2577_v61 = vpop.f32.mrb[39].mxu1 }
 0x4f6   :  { %v1513_v8 = vpop.f32.mrb[40].mxu0 }
 0x4f7   :  { %2110 = vrot.lane.b32.xlu0 %v1513_v8, %s2931_s8  ;;  %v2582_v51 = vpop.f32.mrb[41].mxu0 }
 0x4f8   :  { %v1516_v26 = vpop.f32.mrb[42].mxu0 }
 0x4f9   :  { %2112 = vrot.lane.b32.xlu1 %v1516_v26, %s2931_s8  ;;  %v2583_v49 = vpop.f32.mrb[43].mxu0 }
 0x4fa   :  { %v1560_v44 = vpop.f32.mrb[40].mxu1 }
 0x4fb   :  { %2121 = vrot.lane.b32.xlu0 %v1560_v44, %s2932_s9  ;;  %v2588_v17 = vpop.f32.mrb[41].mxu1 }
 0x4fc   :  { %v1563_v22 = vpop.f32.mrb[42].mxu1 }
 0x4fd   :  { %2123 = vrot.lane.b32.xlu1 %v1563_v22, %s2932_s9  ;;  %v2589_v5 = vpop.f32.mrb[43].mxu1 }
 0x4fe   :  { %v1607_v43 = vpop.f32.mrb[44].mxu0 }
 0x4ff   :  { %2132 = vrot.lane.b32.xlu0 %v1607_v43, %s2933_s10  ;;  %v2594_v11 = vpop.f32.mrb[45].mxu0 }
 0x500   :  { %v1610_v14 = vpop.f32.mrb[46].mxu0 }
 0x501   :  { %2134 = vrot.lane.b32.xlu1 %v1610_v14, %s2933_s10  ;;  %v2595_v2 = vpop.f32.mrb[47].mxu0 }
 0x502   :  { %v1654_v34 = vpop.f32.mrb[44].mxu1 }
 0x503   :  { %2143 = vrot.lane.b32.xlu0 %v1654_v34, %s2934_s11  ;;  %v2600_v20 = vpop.f32.mrb[45].mxu1 }
 0x504   :  { %v1657_v57 = vpop.f32.mrb[46].mxu1 }
 0x505   :  { %2145 = vrot.lane.b32.xlu1 %v1657_v57, %s2934_s11  ;;  %v2601_v21 = vpop.f32.mrb[47].mxu1 }
 0x506   :  { %v1701_v25 = vpop.f32.mrb[48].mxu0 }
 0x507   :  { %2154 = vrot.lane.b32.xlu0 %v1701_v25, %s2935_s12  ;;  %v2606_v30 = vpop.f32.mrb[49].mxu0 }
 0x508   :  { %v1704_v36 = vpop.f32.mrb[50].mxu0 }
 0x509   :  { %2156 = vrot.lane.b32.xlu1 %v1704_v36, %s2935_s12  ;;  %v2607_v54 = vpop.f32.mrb[51].mxu0 }
 0x50a   :  { %v1748_v7 = vpop.f32.mrb[48].mxu1 }
 0x50b   :  { %2163 = vst.msk [vmem:[#allocation2 + $0x10] sm:$0xff] %vm180_vm2, %v1748_v7  ;;  %v2612_v15 = vpop.f32.mrb[49].mxu1 }
 0x50c   :  { %v1751_v48 = vpop.f32.mrb[50].mxu1 }
 0x50d   :  { %2164 = vst.msk [vmem:[#allocation2 + $0x18] sm:$0xff] %vm180_vm2, %v1751_v48  ;;  %v2613_v53 = vpop.f32.mrb[51].mxu1 }
 0x50e   :  { %v1795_v3 = vpop.f32.mrb[52].mxu0 }
 0x50f   :  { %2167 = vrot.lane.b32.xlu0 %v1795_v3, %s2918_s28  ;;  %v2618_v0 = vpop.f32.mrb[53].mxu0  ;;  %v2379_v3 = vld [vmem:[%s3718_s3] ss:$0 sm:$0xff]  ;;  %s2887_s3 = scalar_lea.vmem %s2329_s14, 512 }
 0x510   :  { %v1798_v12 = vpop.f32.mrb[54].mxu0  ;;  %p2888_p10 = scmp.ne.s32.totalorder %s2329_s14, %s2887_s3  ;;  %p2893_p12 = scmp.lt.s32.totalorder %s2887_s3, %s2887_s3 }
 0x511   :  { %2169 = vrot.lane.b32.xlu1 %v1798_v12, %s2918_s28  ;;  %v2619_v32 = vpop.f32.mrb[55].mxu0 }
 0x512   :  { %v1842_v35 = vpop.f32.mrb[52].mxu1  ;;  %p2894_p13 = por %p2893_p12, %p2892_p11 }
 0x513   :  { %2177 = vrot.lane.b32.xlu0 %v1842_v35, %s2930_s27  ;;  %v2624_v1 = vpop.f32.mrb[53].mxu1 }
 0x514   :  { %v1845_v62 = vpop.f32.mrb[54].mxu1  ;;  %p2895_p0 = pnand %p2894_p13, %p2888_p10 }
 0x515   :  { %2179 = vrot.lane.b32.xlu1 %v1845_v62, %s2930_s27  ;;  %v2625_v6 = vpop.f32.mrb[55].mxu1 }
 0x516   :  { %v1889_v56 = vpop.f32.mrb[56].mxu0 }
 0x517   :  { %2187 = vrot.lane.b32.xlu0 %v1889_v56, %s2931_s8  ;;  %v2630_v29 = vpop.f32.mrb[57].mxu0 }
 0x518   :  { %v1892_v52 = vpop.f32.mrb[58].mxu0 }
 0x519   :  { %2189 = vrot.lane.b32.xlu1 %v1892_v52, %s2931_s8  ;;  %v2631_v40 = vpop.f32.mrb[59].mxu0 }
 0x51a   :  { %v1936_v42 = vpop.f32.mrb[56].mxu1 }
 0x51b   :  { %2197 = vrot.lane.b32.xlu0 %v1936_v42, %s2932_s9  ;;  %v2636_v41 = vpop.f32.mrb[57].mxu1 }
 0x51c   :  { %v1939_v39 = vpop.f32.mrb[58].mxu1 }
 0x51d   :  { %2199 = vrot.lane.b32.xlu1 %v1939_v39, %s2932_s9  ;;  %v2637_v24 = vpop.f32.mrb[59].mxu1 }
 0x537   :  { %v1983_v18 = vpop.f32.mrb[60].mxu0 }
 0x538   :  { %2207 = vrot.lane.b32.xlu0 %v1983_v18, %s2933_s10  ;;  %v2642_v23 = vpop.f32.mrb[61].mxu0 }
 0x539   :  { %v1986_v37 = vpop.f32.mrb[62].mxu0 }
 0x53a   :  { %2209 = vrot.lane.b32.xlu1 %v1986_v37, %s2933_s10  ;;  %v2643_v46 = vpop.f32.mrb[63].mxu0 }
 0x53b   :  { %v2030_v19 = vpop.f32.mrb[60].mxu1 }
 0x53c   :  { %2217 = vrot.lane.b32.xlu0 %v2030_v19, %s2934_s11  ;;  %v2648_v55 = vpop.f32.mrb[61].mxu1 }
 0x53d   :  { %v2033_v4 = vpop.f32.mrb[62].mxu1 }
 0x53e   :  { %2219 = vrot.lane.b32.xlu1 %v2033_v4, %s2934_s11  ;;  %v2649_v31 = vpop.f32.mrb[63].mxu1 }
 0x53f   :  { %v2077_v38 = vpop.f32.mrb[64].mxu0 }
 0x540   :  { %v2654_v27 = vpop.f32.mrb[65].mxu0  ;;  %2227 = vrot.lane.b32.xlu0 %v2077_v38, %s2935_s12 }
 0x541   :  { %v2080_v33 = vpop.f32.mrb[66].mxu0 }
 0x542   :  { %v2655_v13 = vpop.f32.mrb[67].mxu0  ;;  %2229 = vrot.lane.b32.xlu1 %v2080_v33, %s2935_s12 }
 0x561   :  { %v2089_v50 = vpop.permute.xlu0 %2088 }
 0x562   :  { %2095 = vst.msk [vmem:[#allocation2] sm:$0xff] %vm2094_vm4, %v2089_v50 }
 0x563   :  { %v2091_v58 = vpop.permute.xlu1 %2090 }
 0x564   :  { %2096 = vst.msk [vmem:[#allocation2 + $0x8] sm:$0xff] %vm2094_vm4, %v2091_v58 }
 0x565   :  { %v2100_v10 = vpop.permute.xlu0 %2099 }
 0x566   :  { %2106 = vst.msk [vmem:[#allocation2] sm:$0xff] %vm2105_vm5, %v2100_v10 }
 0x567   :  { %v2102_v47 = vpop.permute.xlu1 %2101 }
 0x568   :  { %2107 = vst.msk [vmem:[#allocation2 + $0x8] sm:$0xff] %vm2105_vm5, %v2102_v47 }
 0x569   :  { %v2111_v60 = vpop.permute.xlu0 %2110 }
 0x56a   :  { %2117 = vst.msk [vmem:[#allocation2] sm:$0xff] %vm2116_vm6, %v2111_v60 }
 0x56b   :  { %v2113_v63 = vpop.permute.xlu1 %2112 }
 0x56c   :  { %2118 = vst.msk [vmem:[#allocation2 + $0x8] sm:$0xff] %vm2116_vm6, %v2113_v63 }
 0x56d   :  { %v2122_v9 = vpop.permute.xlu0 %2121 }
 0x56e   :  { %2128 = vst.msk [vmem:[#allocation2] sm:$0xff] %vm2127_vm7, %v2122_v9 }
 0x56f   :  { %v2124_v28 = vpop.permute.xlu1 %2123 }
 0x570   :  { %2129 = vst.msk [vmem:[#allocation2 + $0x8] sm:$0xff] %vm2127_vm7, %v2124_v28 }
 0x571   :  { %v2133_v59 = vpop.permute.xlu0 %2132 }
 0x572   :  { %2139 = vst.msk [vmem:[#allocation2] sm:$0xff] %vm2138_vm8, %v2133_v59 }
 0x573   :  { %v2135_v61 = vpop.permute.xlu1 %2134 }
 0x574   :  { %2140 = vst.msk [vmem:[#allocation2 + $0x8] sm:$0xff] %vm2138_vm8, %v2135_v61 }
 0x575   :  { %v2144_v8 = vpop.permute.xlu0 %2143 }
 0x576   :  { %2150 = vst.msk [vmem:[#allocation2] sm:$0xff] %vm2149_vm9, %v2144_v8 }
 0x577   :  { %v2146_v51 = vpop.permute.xlu1 %2145 }
 0x578   :  { %2151 = vst.msk [vmem:[#allocation2 + $0x8] sm:$0xff] %vm2149_vm9, %v2146_v51 }
 0x579   :  { %v2155_v26 = vpop.permute.xlu0 %2154 }
 0x57a   :  { %2161 = vst.msk [vmem:[#allocation2] sm:$0xff] %vm2160_vm10, %v2155_v26 }
 0x57b   :  { %v2157_v49 = vpop.permute.xlu1 %2156 }
 0x57c   :  { %2162 = vst.msk [vmem:[#allocation2 + $0x8] sm:$0xff] %vm2160_vm10, %v2157_v49 }
 0x581   :  { %v2168_v44 = vpop.permute.xlu0 %2167  ;;  %v2235_v22 = vld [vmem:[#allocation2] sm:$0xff] }
 0x582   :  { %2173 = vst.msk [vmem:[#allocation2 + $0x10] sm:$0xff] %vm2094_vm4, %v2168_v44 }
 0x583   :  { %v2170_v17 = vpop.permute.xlu1 %2169  ;;  %v2236_v5 = vld [vmem:[#allocation2 + $0x8] sm:$0xff] }
 0x584   :  { %2174 = vst.msk [vmem:[#allocation2 + $0x18] sm:$0xff] %vm2094_vm4, %v2170_v17  ;;  %v2239_v43 = vpack.c.bf16 %v2236_v5, %v2235_v22 }
 0x585   :  { %v2178_v11 = vpop.permute.xlu0 %2177 }
 0x586   :  { %2183 = vst.msk [vmem:[#allocation2 + $0x10] sm:$0xff] %vm2105_vm5, %v2178_v11  ;;  %2660 = vmatprep.mubr.msk.bf16.mxu1 %vm90_vm0, %v2239_v43 }
 0x587   :  { %v2180_v14 = vpop.permute.xlu1 %2179 }
 0x588   :  { %2184 = vst.msk [vmem:[#allocation2 + $0x18] sm:$0xff] %vm2105_vm5, %v2180_v14 }
 0x589   :  { %v2188_v2 = vpop.permute.xlu0 %2187 }
 0x58a   :  { %2193 = vst.msk [vmem:[#allocation2 + $0x10] sm:$0xff] %vm2116_vm6, %v2188_v2 }
 0x58b   :  { %v2190_v34 = vpop.permute.xlu1 %2189 }
 0x58c   :  { %2194 = vst.msk [vmem:[#allocation2 + $0x18] sm:$0xff] %vm2116_vm6, %v2190_v34 }
 0x58d   :  { %v2198_v20 = vpop.permute.xlu0 %2197 }
 0x58e   :  { %2203 = vst.msk [vmem:[#allocation2 + $0x10] sm:$0xff] %vm2127_vm7, %v2198_v20 }
 0x58f   :  { %v2200_v57 = vpop.permute.xlu1 %2199 }
 0x590   :  { %2204 = vst.msk [vmem:[#allocation2 + $0x18] sm:$0xff] %vm2127_vm7, %v2200_v57 }
 0x5aa   :  { %v2208_v21 = vpop.permute.xlu0 %2207 }
 0x5ab   :  { %2213 = vst.msk [vmem:[#allocation2 + $0x10] sm:$0xff] %vm2138_vm8, %v2208_v21 }
 0x5ac   :  { %v2210_v25 = vpop.permute.xlu1 %2209 }
 0x5ad   :  { %2214 = vst.msk [vmem:[#allocation2 + $0x18] sm:$0xff] %vm2138_vm8, %v2210_v25 }
 0x5ae   :  { %v2218_v30 = vpop.permute.xlu0 %2217 }
 0x5af   :  { %2223 = vst.msk [vmem:[#allocation2 + $0x10] sm:$0xff] %vm2149_vm9, %v2218_v30 }
 0x5b0   :  { %v2220_v36 = vpop.permute.xlu1 %2219 }
 0x5b1   :  { %2224 = vst.msk [vmem:[#allocation2 + $0x18] sm:$0xff] %vm2149_vm9, %v2220_v36 }
 0x5b2   :  { %v2228_v54 = vpop.permute.xlu0 %2227 }
 0x5b3   :  { %2233 = vst.msk [vmem:[#allocation2 + $0x10] sm:$0xff] %vm2160_vm10, %v2228_v54 }
 0x5b4   :  { %v2230_v7 = vpop.permute.xlu1 %2229 }
 0x5b5   :  { %2234 = vst.msk [vmem:[#allocation2 + $0x18] sm:$0xff] %vm2160_vm10, %v2230_v7 }
 0x5ba   :  { %v2237_v15 = vld [vmem:[#allocation2 + $0x10] sm:$0xff] }
 0x5bc   :  { %v2238_v48 = vld [vmem:[#allocation2 + $0x18] sm:$0xff] }
 0x5bd   :  { %v2240_v53 = vpack.c.bf16 %v2238_v48, %v2237_v15 }
 0x5bf   :  { %2661 = vmatmul.mubr.msk.bf16.vlgmr.msra.gmra.mrb[64].mxu1 %vm90_vm0, %v2240_v53 }
 0x692   :  { %v2662_v0 = vpop.f32.mrb[64].mxu1 }
 0x693   :  { %v2313_v12 = vadd.f32 %v2662_v0, %v2379_v3  ;;  %v2304_v32 = vpop.f32.mrb[65].mxu1 }
 0x694   :  { %v2305_v35 = vadd.f32 %v2379_v3, %v2304_v32  ;;  %v2663_v1 = vpop.f32.mrb[66].mxu1 }
 0x695   :  { %2321 = vst.msk [vmem:[#allocation9 + $0x10] sm:$0xff] %vm90_vm0, %v2313_v12  ;;  %v2316_v62 = vadd.f32 %v2663_v1, %v2379_v3  ;;  %v2307_v6 = vpop.f32.mrb[67].mxu1 }
 0x696   :  { %2319 = vst.msk [vmem:[#allocation9] sm:$0xff] %vm90_vm0, %v2305_v35  ;;  %v2308_v56 = vadd.f32 %v2379_v3, %v2307_v6 }
 0x697   :  { %2322 = vst.msk [vmem:[#allocation9 + $0x18] sm:$0xff] %vm90_vm0, %v2316_v62 }
 0x698   :  { %2320 = vst.msk [vmem:[#allocation9 + $0x8] sm:$0xff] %vm90_vm0, %v2308_v56 }
 0x699   :  { %2898 = shalt.err (!%p2895_p0)
}
 0x69a   :  { %s2899_s17 = scalar_lea.hbm %s3719_s4, 512 }
 0x69b   :  { %p2900_p1 = scmp.ne.s32.totalorder %s3719_s4, %s2899_s17  ;;  %p2903_p2 = scmp.lt.u32.totalorder %s2899_s17, %s3719_s4 }
 0x69d   :  { %p2905_p3 = pnand %p2903_p2, %p2900_p1 }
 0x69f   :  { %2908 = shalt.err (!%p2905_p3)
}
 0x6a0   :  { %s2937_s23 = smov 128  }
 0x6a1   :  { %2334 = dma.vmem_to_hbm [thread:$0]  %s2329_s14, 512, %s3719_s4, [#allocation5], %s2937_s23, %s2937_s23, %s2930_s27  }
 0x6a2   :  { %2913 = dma.done.wait [#allocation5], 512  }
 0x6a3   :  { %2914 = vsyncadd [#allocation5], 4294966784 }
 0x6a4   :  { %2338 = vsyncpa [#allocation4], 1 }
 0x6a5   :  { %2339 = vsyncpa [#allocation7], 1 }
 0x6a6   :  { %2340 = vsyncpa [#allocation5], 1 }

</bundles_post_ra>
